<compile_context>
chip_gen: v5e
topology: v5e:2x2
jax: 0.10.0
libtpu: 0.0.40
codegen_flags: <defaults>
</compile_context>

<pallas_src>
import functools

import jax
import jax.numpy as jnp
from jax.experimental import pallas as pl
from jax.experimental.pallas import tpu as pltpu


def _round_up(x, m):
    return (x + m - 1) // m * m


def _fused_kernel(cols_ref, w1_ref, b1_ref, w2_ref, b2_ref, o_ref,
                  y1_ref, acc_ref, *, nb, oh, ow):
    # cols_ref : (NB, OH*OW, 9*Cin)  stride-2 im2col of the zero-padded input
    # w1_ref   : (9*Cin, Cp)         conv1 weights with the 3x3 taps folded into K
    # b1_ref   : (1, Cp)
    # w2_ref   : (9, Cp, Cp)         conv2 weights, tap-major
    # b2_ref   : (1, Cp)
    # o_ref    : (NB, OH*OW, Cp)
    # y1_ref   : VMEM (NB, OH+2, OW+2, Cp) f32 scratch (conv1 out, pad=1 for conv2)
    # acc_ref  : VMEM (NB*OH*OW, Cp)  f32 scratch (conv2 accumulator)
    m = nb * oh * ow
    k1 = cols_ref.shape[-1]
    cp = o_ref.shape[-1]

    # ---- conv1: one MXU contraction, K = 9*Cin, f32 accumulation ----
    y1 = jnp.dot(cols_ref[...].reshape(m, k1), w1_ref[...],
                 preferred_element_type=jnp.float32)
    y1 = y1 + b1_ref[...].astype(jnp.float32)

    # ---- stage conv1 output into a spatially padded scratch (conv2's padding=1) ----
    # Zero only the 1-pixel border each step; interior is fully rewritten below, so
    # correctness does not depend on scratch persistence across grid iterations.
    zr = jnp.zeros((nb, 1, ow + 2, cp), jnp.float32)
    y1_ref[:, 0:1, :, :] = zr
    y1_ref[:, oh + 1:oh + 2, :, :] = zr
    zc = jnp.zeros((nb, oh + 2, 1, cp), jnp.float32)
    y1_ref[:, :, 0:1, :] = zc
    y1_ref[:, :, ow + 1:ow + 2, :] = zc
    y1_ref[:, 1:oh + 1, 1:ow + 1, :] = y1.reshape(nb, oh, ow, cp)

    # ---- conv2: 9 shifted-window matmuls, lane-dense K = N = Cp, VMEM accumulation ----
    for kh in range(3):
        for kw in range(3):
            t = kh * 3 + kw
            win = y1_ref[:, kh:kh + oh, kw:kw + ow, :].reshape(m, cp)
            contrib = jnp.dot(win, w2_ref[t], preferred_element_type=jnp.float32)
            if t == 0:
                acc_ref[...] = contrib
            else:
                acc_ref[...] += contrib

    out = jnp.maximum(acc_ref[...] + b2_ref[...].astype(jnp.float32), 0.0)
    o_ref[...] = out.reshape(nb, oh * ow, cp).astype(o_ref.dtype)


def _conv1_kernel(cols_ref, w1_ref, b1_ref, o_ref, *, nb, oh, ow):
    # withConvRelu=False path: single stride-2 conv (+ bias), no ReLU, no scratch.
    m = nb * oh * ow
    y = jnp.dot(cols_ref[...].reshape(m, cols_ref.shape[-1]), w1_ref[...],
                preferred_element_type=jnp.float32)
    y = y + b1_ref[...].astype(jnp.float32)
    o_ref[...] = y.reshape(nb, oh * ow, o_ref.shape[-1]).astype(o_ref.dtype)


def _vmem_capacity_bytes():
    try:
        return int(pltpu.get_tpu_info().vmem_capacity_bytes)
    except Exception:
        return 64 * 1024 * 1024  # conservative (v7x-sized) fallback


def _pick_nb(n, oh, ow, cin, cp, itemsize, fused, budget):
    """Largest per-step image count NB with NB*OH*OW >= ~512 rows that fits VMEM."""
    rows_target = 512
    nb = max(1, min(n, -(-rows_target // (oh * ow))))

    def need(nb_):
        m = nb_ * oh * ow
        b = 2 * m * 9 * cin * itemsize                 # input cols block (double-buffered)
        b += 2 * m * cp * itemsize                     # output block (double-buffered)
        b += 2 * (9 * cin * cp + 2 * cp) * itemsize    # conv1 weights + biases
        if fused:
            b += nb_ * (oh + 2) * (ow + 2) * cp * 4    # padded conv1 scratch (f32)
            b += m * cp * 4                            # conv2 accumulator (f32)
            b += 2 * 9 * cp * cp * itemsize            # conv2 weights
        return b

    while nb > 1 and need(nb) > budget:
        nb -= 1
    return nb, need(nb)


def downsample_block(x, w1, b1, w2=None, b2=None, *, with_conv_relu=True):
    """Forward pass of DownsampleBlock for NCHW `x`.

    w1: (3, 3, Cin, Cout) HWIO, b1: (Cout,)   -- stride-2 conv
    w2: (3, 3, Cout, Cout), b2: (Cout,)       -- stride-1 conv (withConvRelu=True path)
    Returns NCHW (N, Cout, (H+1)//2, (W+1)//2).
    """
    N, Cin, H, W = x.shape
    Cout = w1.shape[-1]
    OH = (H - 1) // 2 + 1
    OW = (W - 1) // 2 + 1
    Cp = _round_up(Cout, 128)            # lane-dense output channels
    itemsize = jnp.dtype(x.dtype).itemsize

    # Zero-FLOP layout plumbing in plain JAX: NCHW -> NHWC, pad by 1, stride-2 im2col
    # so conv1 is one matmul with K = 9*Cin inside the kernel.
    xh = jnp.transpose(x, (0, 2, 3, 1))                         # (N, H, W, Cin)
    xpad = jnp.pad(xh, ((0, 0), (1, 1), (1, 1), (0, 0)))        # (N, H+2, W+2, Cin)
    taps = [xpad[:, kh:kh + 2 * OH - 1:2, kw:kw + 2 * OW - 1:2, :]
            for kh in range(3) for kw in range(3)]
    cols = jnp.concatenate(taps, axis=-1).reshape(N, OH * OW, 9 * Cin)
    # TODO(synk): at HBM-bound production sizes, fuse this im2col with the producer or
    # do strided in-kernel reads instead of a separate pre-pass over the input.

    # Channel padding to a multiple of 128 (padded rows/cols are zero, so they
    # contribute nothing; padded output channels are sliced off below).
    w1p = jnp.zeros((3, 3, Cin, Cp), w1.dtype).at[..., :Cout].set(w1)
    w1f = w1p.reshape(9 * Cin, Cp)
    b1p = jnp.zeros((1, Cp), b1.dtype).at[0, :Cout].set(b1)

    cap = _vmem_capacity_bytes()
    nb, need = _pick_nb(N, OH, OW, Cin, Cp, itemsize, with_conv_relu, cap // 2)
    n_pad = _round_up(N, nb)
    if n_pad != N:
        cols = jnp.pad(cols, ((0, n_pad - N), (0, 0), (0, 0)))
    grid = (n_pad // nb,)

    vmem_limit = int(min(cap * 3 // 4, max(32 << 20, 2 * need)))
    cparams = pltpu.CompilerParams(dimension_semantics=("parallel",),
                                   vmem_limit_bytes=vmem_limit)

    if with_conv_relu:
        assert w2 is not None and b2 is not None
        w2p = jnp.zeros((3, 3, Cp, Cp), w2.dtype).at[:, :, :Cout, :Cout].set(w2)
        w2f = w2p.reshape(9, Cp, Cp)
        b2p = jnp.zeros((1, Cp), b2.dtype).at[0, :Cout].set(b2)
        kernel = functools.partial(_fused_kernel, nb=nb, oh=OH, ow=OW)
        out = pl.pallas_call(
            kernel,
            out_shape=jax.ShapeDtypeStruct((n_pad, OH * OW, Cp), x.dtype),
            grid=grid,
            in_specs=[
                pl.BlockSpec((nb, OH * OW, 9 * Cin), lambda n: (n, 0, 0)),
                pl.BlockSpec((9 * Cin, Cp), lambda n: (0, 0)),
                pl.BlockSpec((1, Cp), lambda n: (0, 0)),
                pl.BlockSpec((9, Cp, Cp), lambda n: (0, 0, 0)),
                pl.BlockSpec((1, Cp), lambda n: (0, 0)),
            ],
            out_specs=pl.BlockSpec((nb, OH * OW, Cp), lambda n: (n, 0, 0)),
            scratch_shapes=[
                pltpu.VMEM((nb, OH + 2, OW + 2, Cp), jnp.float32),
                pltpu.VMEM((nb * OH * OW, Cp), jnp.float32),
            ],
            compiler_params=cparams,
        )(cols, w1f, b1p, w2f, b2p)
    else:
        kernel = functools.partial(_conv1_kernel, nb=nb, oh=OH, ow=OW)
        out = pl.pallas_call(
            kernel,
            out_shape=jax.ShapeDtypeStruct((n_pad, OH * OW, Cp), x.dtype),
            grid=grid,
            in_specs=[
                pl.BlockSpec((nb, OH * OW, 9 * Cin), lambda n: (n, 0, 0)),
                pl.BlockSpec((9 * Cin, Cp), lambda n: (0, 0)),
                pl.BlockSpec((1, Cp), lambda n: (0, 0)),
            ],
            out_specs=pl.BlockSpec((nb, OH * OW, Cp), lambda n: (n, 0, 0)),
            compiler_params=cparams,
        )(cols, w1f, b1p)

    out = out[:N, :, :Cout].reshape(N, OH, OW, Cout)
    return jnp.transpose(out, (0, 3, 1, 2))


def _reference(x, w1, b1, w2, b2, with_conv_relu=True):
    dn = ("NCHW", "HWIO", "NCHW")
    y = jax.lax.conv_general_dilated(x, w1, (2, 2), ((1, 1), (1, 1)),
                                     dimension_numbers=dn)
    y = y + b1[None, :, None, None]
    if not with_conv_relu:
        return y
    z = jax.lax.conv_general_dilated(y, w2, (1, 1), ((1, 1), (1, 1)),
                                     dimension_numbers=dn)
    z = z + b2[None, :, None, None]
    return jnp.maximum(z, 0.0)


if __name__ == "__main__":
    key = jax.random.PRNGKey(0)
    k1, k2, k3, k4, k5 = jax.random.split(key, 5)
    N, Cin, H, W, Cout = 2, 4, 16, 16, 8

    # TODO(synk): PyTorch's default Kaiming init is not replicated; weights are inputs.
    x = jax.random.normal(k1, (N, Cin, H, W), jnp.float32)
    w1 = jax.random.normal(k2, (3, 3, Cin, Cout), jnp.float32) * 0.1
    b1 = jax.random.normal(k3, (Cout,), jnp.float32) * 0.1
    w2 = jax.random.normal(k4, (3, 3, Cout, Cout), jnp.float32) * 0.1
    b2 = jax.random.normal(k5, (Cout,), jnp.float32) * 0.1

    # withConvRelu=True path (default): conv/s2 -> conv -> ReLU
    out = jax.block_until_ready(downsample_block(x, w1, b1, w2, b2))
    ref = _reference(x, w1, b1, w2, b2)
    assert out.shape == (N, Cout, H // 2, W // 2), out.shape
    assert out.dtype == x.dtype
    assert jnp.allclose(out, ref, atol=1e-4, rtol=1e-4), \
        float(jnp.max(jnp.abs(out - ref)))

    # withConvRelu=False path: single stride-2 conv (+bias)
    out2 = jax.block_until_ready(downsample_block(x, w1, b1, with_conv_relu=False))
    ref2 = _reference(x, w1, b1, w2, b2, with_conv_relu=False)
    assert jnp.allclose(out2, ref2, atol=1e-4, rtol=1e-4), \
        float(jnp.max(jnp.abs(out2 - ref2)))

    print("KERNEL_OK")
</pallas_src>

<mosaic_0001>
module attributes {stable_mosaic.version = 11 : i64} {
  func.func @_fused_kernel(%arg0: i32, %arg1: memref<2x64x36xf32, #tpu.memory_space<vmem>>, %arg2: memref<36x128xf32, #tpu.memory_space<vmem>>, %arg3: memref<1x128xf32, #tpu.memory_space<vmem>>, %arg4: memref<9x128x128xf32, #tpu.memory_space<vmem>>, %arg5: memref<1x128xf32, #tpu.memory_space<vmem>>, %arg6: memref<2x64x128xf32, #tpu.memory_space<vmem>>, %arg7: memref<2x10x10x128xf32, #tpu.memory_space<vmem>>, %arg8: memref<128x128xf32, #tpu.memory_space<vmem>>) attributes {dimension_semantics = [#tpu.dimension_semantics<parallel>], iteration_bounds = array<i64: 1>, scalar_prefetch = 0 : i64, scratch_operands = 2 : i64, tpu.core_type = #tpu.core_type<tc>, window_params = [{transform_indices = @transform_0, window_bounds = array<i64: 2, 64, 36>}, {pipeline_mode = #tpu.pipeline_mode<synchronous>, transform_indices = @transform_1, window_bounds = array<i64: 36, 128>}, {pipeline_mode = #tpu.pipeline_mode<synchronous>, transform_indices = @transform_2, window_bounds = array<i64: 1, 128>}, {pipeline_mode = #tpu.pipeline_mode<synchronous>, transform_indices = @transform_3, window_bounds = array<i64: 9, 128, 128>}, {pipeline_mode = #tpu.pipeline_mode<synchronous>, transform_indices = @transform_4, window_bounds = array<i64: 1, 128>}, {transform_indices = @transform_5, window_bounds = array<i64: 2, 64, 128>}]} {
    %c0 = arith.constant 0 : index
    %c0_0 = arith.constant 0 : index
    %c0_1 = arith.constant 0 : index
    %0 = vector.load %arg1[%c0, %c0_0, %c0_1] : memref<2x64x36xf32, #tpu.memory_space<vmem>>, vector<2x64x36xf32>
    %1 = vector.shape_cast %0 : vector<2x64x36xf32> to vector<128x36xf32>
    %c0_2 = arith.constant 0 : index
    %c0_3 = arith.constant 0 : index
    %2 = vector.load %arg2[%c0_2, %c0_3] : memref<36x128xf32, #tpu.memory_space<vmem>>, vector<36x128xf32>
    %cst = arith.constant dense<0.000000e+00> : vector<128x128xf32>
    %3 = tpu.matmul %1, %2, %cst {dimension_numbers = #tpu.dot_dimension_numbers<[1], [0], [0], [1], [0, 0, 1, 1], [], []>} : vector<128x36xf32>, vector<36x128xf32>, vector<128x128xf32> -> vector<128x128xf32>
    %c0_4 = arith.constant 0 : index
    %c0_5 = arith.constant 0 : index
    %4 = vector.load %arg3[%c0_4, %c0_5] : memref<1x128xf32, #tpu.memory_space<vmem>>, vector<1x128xf32>
    %5 = vector.broadcast %4 : vector<1x128xf32> to vector<128x128xf32>
    %6 = arith.addf %3, %5 : vector<128x128xf32>
    %cst_6 = arith.constant 0.000000e+00 : f32
    %7 = vector.broadcast %cst_6 : f32 to vector<2x1x10x128xf32>
    %c0_7 = arith.constant 0 : index
    %c0_8 = arith.constant 0 : index
    %c0_9 = arith.constant 0 : index
    %c0_10 = arith.constant 0 : index
    %8 = vector.load %arg7[%c0_7, %c0_8, %c0_9, %c0_10] : memref<2x10x10x128xf32, #tpu.memory_space<vmem>>, vector<2x1x10x128xf32>
    tpu.vector_store %arg7[%c0_7, %c0_8, %c0_9, %c0_10], %7 {strides = array<i32>} : memref<2x10x10x128xf32, #tpu.memory_space<vmem>>, vector<2x1x10x128xf32>,
    %c0_11 = arith.constant 0 : index
    %c9 = arith.constant 9 : index
    %c0_12 = arith.constant 0 : index
    %c0_13 = arith.constant 0 : index
    %9 = vector.load %arg7[%c0_11, %c9, %c0_12, %c0_13] : memref<2x10x10x128xf32, #tpu.memory_space<vmem>>, vector<2x1x10x128xf32>
    tpu.vector_store %arg7[%c0_11, %c9, %c0_12, %c0_13], %7 {strides = array<i32>} : memref<2x10x10x128xf32, #tpu.memory_space<vmem>>, vector<2x1x10x128xf32>,
    %cst_14 = arith.constant 0.000000e+00 : f32
    %10 = vector.broadcast %cst_14 : f32 to vector<2x10x1x128xf32>
    %c0_15 = arith.constant 0 : index
    %c0_16 = arith.constant 0 : index
    %c0_17 = arith.constant 0 : index
    %c0_18 = arith.constant 0 : index
    %11 = vector.load %arg7[%c0_15, %c0_16, %c0_17, %c0_18] : memref<2x10x10x128xf32, #tpu.memory_space<vmem>>, vector<2x10x1x128xf32>
    tpu.vector_store %arg7[%c0_15, %c0_16, %c0_17, %c0_18], %10 {strides = array<i32>} : memref<2x10x10x128xf32, #tpu.memory_space<vmem>>, vector<2x10x1x128xf32>,
    %c0_19 = arith.constant 0 : index
    %c0_20 = arith.constant 0 : index
    %c9_21 = arith.constant 9 : index
    %c0_22 = arith.constant 0 : index
    %12 = vector.load %arg7[%c0_19, %c0_20, %c9_21, %c0_22] : memref<2x10x10x128xf32, #tpu.memory_space<vmem>>, vector<2x10x1x128xf32>
    tpu.vector_store %arg7[%c0_19, %c0_20, %c9_21, %c0_22], %10 {strides = array<i32>} : memref<2x10x10x128xf32, #tpu.memory_space<vmem>>, vector<2x10x1x128xf32>,
    %13 = vector.shape_cast %6 : vector<128x128xf32> to vector<2x8x8x128xf32>
    %c0_23 = arith.constant 0 : index
    %c1 = arith.constant 1 : index
    %c1_24 = arith.constant 1 : index
    %c0_25 = arith.constant 0 : index
    %14 = vector.load %arg7[%c0_23, %c1, %c1_24, %c0_25] : memref<2x10x10x128xf32, #tpu.memory_space<vmem>>, vector<2x8x8x128xf32>
    tpu.vector_store %arg7[%c0_23, %c1, %c1_24, %c0_25], %13 {strides = array<i32>} : memref<2x10x10x128xf32, #tpu.memory_space<vmem>>, vector<2x8x8x128xf32>,
    %c0_26 = arith.constant 0 : index
    %c0_27 = arith.constant 0 : index
    %c0_28 = arith.constant 0 : index
    %c0_29 = arith.constant 0 : index
    %15 = vector.load %arg7[%c0_26, %c0_27, %c0_28, %c0_29] : memref<2x10x10x128xf32, #tpu.memory_space<vmem>>, vector<2x8x8x128xf32>
    %16 = vector.shape_cast %15 : vector<2x8x8x128xf32> to vector<128x128xf32>
    %c0_30 = arith.constant 0 : index
    %c0_31 = arith.constant 0 : index
    %c0_32 = arith.constant 0 : index
    %17 = vector.load %arg4[%c0_30, %c0_31, %c0_32] : memref<9x128x128xf32, #tpu.memory_space<vmem>>, vector<1x128x128xf32>
    %18 = vector.shape_cast %17 : vector<1x128x128xf32> to vector<128x128xf32>
    %cst_33 = arith.constant dense<0.000000e+00> : vector<128x128xf32>
    %19 = tpu.matmul %16, %18, %cst_33 {dimension_numbers = #tpu.dot_dimension_numbers<[1], [0], [0], [1], [0, 0, 1, 1], [], []>} : vector<128x128xf32>, vector<128x128xf32>, vector<128x128xf32> -> vector<128x128xf32>
    %c0_34 = arith.constant 0 : index
    %c0_35 = arith.constant 0 : index
    %20 = vector.load %arg8[%c0_34, %c0_35] : memref<128x128xf32, #tpu.memory_space<vmem>>, vector<128x128xf32>
    tpu.vector_store %arg8[%c0_34, %c0_35], %19 {strides = array<i32>} : memref<128x128xf32, #tpu.memory_space<vmem>>, vector<128x128xf32>,
    %c0_36 = arith.constant 0 : index
    %c0_37 = arith.constant 0 : index
    %c1_38 = arith.constant 1 : index
    %c0_39 = arith.constant 0 : index
    %21 = vector.load %arg7[%c0_36, %c0_37, %c1_38, %c0_39] : memref<2x10x10x128xf32, #tpu.memory_space<vmem>>, vector<2x8x8x128xf32>
    %22 = vector.shape_cast %21 : vector<2x8x8x128xf32> to vector<128x128xf32>
    %c1_40 = arith.constant 1 : index
    %c0_41 = arith.constant 0 : index
    %c0_42 = arith.constant 0 : index
    %23 = vector.load %arg4[%c1_40, %c0_41, %c0_42] : memref<9x128x128xf32, #tpu.memory_space<vmem>>, vector<1x128x128xf32>
    %24 = vector.shape_cast %23 : vector<1x128x128xf32> to vector<128x128xf32>
    %cst_43 = arith.constant dense<0.000000e+00> : vector<128x128xf32>
    %25 = tpu.matmul %22, %24, %cst_43 {dimension_numbers = #tpu.dot_dimension_numbers<[1], [0], [0], [1], [0, 0, 1, 1], [], []>} : vector<128x128xf32>, vector<128x128xf32>, vector<128x128xf32> -> vector<128x128xf32>
    %c0_44 = arith.constant 0 : index
    %c0_45 = arith.constant 0 : index
    %26 = vector.load %arg8[%c0_44, %c0_45] : memref<128x128xf32, #tpu.memory_space<vmem>>, vector<128x128xf32>
    %27 = arith.addf %26, %25 : vector<128x128xf32>
    %c0_46 = arith.constant 0 : index
    %c0_47 = arith.constant 0 : index
    %28 = vector.load %arg8[%c0_46, %c0_47] : memref<128x128xf32, #tpu.memory_space<vmem>>, vector<128x128xf32>
    tpu.vector_store %arg8[%c0_46, %c0_47], %27 {strides = array<i32>} : memref<128x128xf32, #tpu.memory_space<vmem>>, vector<128x128xf32>,
    %c0_48 = arith.constant 0 : index
    %c0_49 = arith.constant 0 : index
    %c2 = arith.constant 2 : index
    %c0_50 = arith.constant 0 : index
    %29 = vector.load %arg7[%c0_48, %c0_49, %c2, %c0_50] : memref<2x10x10x128xf32, #tpu.memory_space<vmem>>, vector<2x8x8x128xf32>
    %30 = vector.shape_cast %29 : vector<2x8x8x128xf32> to vector<128x128xf32>
    %c2_51 = arith.constant 2 : index
    %c0_52 = arith.constant 0 : index
    %c0_53 = arith.constant 0 : index
    %31 = vector.load %arg4[%c2_51, %c0_52, %c0_53] : memref<9x128x128xf32, #tpu.memory_space<vmem>>, vector<1x128x128xf32>
    %32 = vector.shape_cast %31 : vector<1x128x128xf32> to vector<128x128xf32>
    %cst_54 = arith.constant dense<0.000000e+00> : vector<128x128xf32>
    %33 = tpu.matmul %30, %32, %cst_54 {dimension_numbers = #tpu.dot_dimension_numbers<[1], [0], [0], [1], [0, 0, 1, 1], [], []>} : vector<128x128xf32>, vector<128x128xf32>, vector<128x128xf32> -> vector<128x128xf32>
    %c0_55 = arith.constant 0 : index
    %c0_56 = arith.constant 0 : index
    %34 = vector.load %arg8[%c0_55, %c0_56] : memref<128x128xf32, #tpu.memory_space<vmem>>, vector<128x128xf32>
    %35 = arith.addf %34, %33 : vector<128x128xf32>
    %c0_57 = arith.constant 0 : index
    %c0_58 = arith.constant 0 : index
    %36 = vector.load %arg8[%c0_57, %c0_58] : memref<128x128xf32, #tpu.memory_space<vmem>>, vector<128x128xf32>
    tpu.vector_store %arg8[%c0_57, %c0_58], %35 {strides = array<i32>} : memref<128x128xf32, #tpu.memory_space<vmem>>, vector<128x128xf32>,
    %c0_59 = arith.constant 0 : index
    %c1_60 = arith.constant 1 : index
    %c0_61 = arith.constant 0 : index
    %c0_62 = arith.constant 0 : index
    %37 = vector.load %arg7[%c0_59, %c1_60, %c0_61, %c0_62] : memref<2x10x10x128xf32, #tpu.memory_space<vmem>>, vector<2x8x8x128xf32>
    %38 = vector.shape_cast %37 : vector<2x8x8x128xf32> to vector<128x128xf32>
    %c3 = arith.constant 3 : index
    %c0_63 = arith.constant 0 : index
    %c0_64 = arith.constant 0 : index
    %39 = vector.load %arg4[%c3, %c0_63, %c0_64] : memref<9x128x128xf32, #tpu.memory_space<vmem>>, vector<1x128x128xf32>
    %40 = vector.shape_cast %39 : vector<1x128x128xf32> to vector<128x128xf32>
    %cst_65 = arith.constant dense<0.000000e+00> : vector<128x128xf32>
    %41 = tpu.matmul %38, %40, %cst_65 {dimension_numbers = #tpu.dot_dimension_numbers<[1], [0], [0], [1], [0, 0, 1, 1], [], []>} : vector<128x128xf32>, vector<128x128xf32>, vector<128x128xf32> -> vector<128x128xf32>
    %c0_66 = arith.constant 0 : index
    %c0_67 = arith.constant 0 : index
    %42 = vector.load %arg8[%c0_66, %c0_67] : memref<128x128xf32, #tpu.memory_space<vmem>>, vector<128x128xf32>
    %43 = arith.addf %42, %41 : vector<128x128xf32>
    %c0_68 = arith.constant 0 : index
    %c0_69 = arith.constant 0 : index
    %44 = vector.load %arg8[%c0_68, %c0_69] : memref<128x128xf32, #tpu.memory_space<vmem>>, vector<128x128xf32>
    tpu.vector_store %arg8[%c0_68, %c0_69], %43 {strides = array<i32>} : memref<128x128xf32, #tpu.memory_space<vmem>>, vector<128x128xf32>,
    %c0_70 = arith.constant 0 : index
    %c1_71 = arith.constant 1 : index
    %c1_72 = arith.constant 1 : index
    %c0_73 = arith.constant 0 : index
    %45 = vector.load %arg7[%c0_70, %c1_71, %c1_72, %c0_73] : memref<2x10x10x128xf32, #tpu.memory_space<vmem>>, vector<2x8x8x128xf32>
    %46 = vector.shape_cast %45 : vector<2x8x8x128xf32> to vector<128x128xf32>
    %c4 = arith.constant 4 : index
    %c0_74 = arith.constant 0 : index
    %c0_75 = arith.constant 0 : index
    %47 = vector.load %arg4[%c4, %c0_74, %c0_75] : memref<9x128x128xf32, #tpu.memory_space<vmem>>, vector<1x128x128xf32>
    %48 = vector.shape_cast %47 : vector<1x128x128xf32> to vector<128x128xf32>
    %cst_76 = arith.constant dense<0.000000e+00> : vector<128x128xf32>
    %49 = tpu.matmul %46, %48, %cst_76 {dimension_numbers = #tpu.dot_dimension_numbers<[1], [0], [0], [1], [0, 0, 1, 1], [], []>} : vector<128x128xf32>, vector<128x128xf32>, vector<128x128xf32> -> vector<128x128xf32>
    %c0_77 = arith.constant 0 : index
    %c0_78 = arith.constant 0 : index
    %50 = vector.load %arg8[%c0_77, %c0_78] : memref<128x128xf32, #tpu.memory_space<vmem>>, vector<128x128xf32>
    %51 = arith.addf %50, %49 : vector<128x128xf32>
    %c0_79 = arith.constant 0 : index
    %c0_80 = arith.constant 0 : index
    %52 = vector.load %arg8[%c0_79, %c0_80] : memref<128x128xf32, #tpu.memory_space<vmem>>, vector<128x128xf32>
    tpu.vector_store %arg8[%c0_79, %c0_80], %51 {strides = array<i32>} : memref<128x128xf32, #tpu.memory_space<vmem>>, vector<128x128xf32>,
    %c0_81 = arith.constant 0 : index
    %c1_82 = arith.constant 1 : index
    %c2_83 = arith.constant 2 : index
    %c0_84 = arith.constant 0 : index
    %53 = vector.load %arg7[%c0_81, %c1_82, %c2_83, %c0_84] : memref<2x10x10x128xf32, #tpu.memory_space<vmem>>, vector<2x8x8x128xf32>
    %54 = vector.shape_cast %53 : vector<2x8x8x128xf32> to vector<128x128xf32>
    %c5 = arith.constant 5 : index
    %c0_85 = arith.constant 0 : index
    %c0_86 = arith.constant 0 : index
    %55 = vector.load %arg4[%c5, %c0_85, %c0_86] : memref<9x128x128xf32, #tpu.memory_space<vmem>>, vector<1x128x128xf32>
    %56 = vector.shape_cast %55 : vector<1x128x128xf32> to vector<128x128xf32>
    %cst_87 = arith.constant dense<0.000000e+00> : vector<128x128xf32>
    %57 = tpu.matmul %54, %56, %cst_87 {dimension_numbers = #tpu.dot_dimension_numbers<[1], [0], [0], [1], [0, 0, 1, 1], [], []>} : vector<128x128xf32>, vector<128x128xf32>, vector<128x128xf32> -> vector<128x128xf32>
    %c0_88 = arith.constant 0 : index
    %c0_89 = arith.constant 0 : index
    %58 = vector.load %arg8[%c0_88, %c0_89] : memref<128x128xf32, #tpu.memory_space<vmem>>, vector<128x128xf32>
    %59 = arith.addf %58, %57 : vector<128x128xf32>
    %c0_90 = arith.constant 0 : index
    %c0_91 = arith.constant 0 : index
    %60 = vector.load %arg8[%c0_90, %c0_91] : memref<128x128xf32, #tpu.memory_space<vmem>>, vector<128x128xf32>
    tpu.vector_store %arg8[%c0_90, %c0_91], %59 {strides = array<i32>} : memref<128x128xf32, #tpu.memory_space<vmem>>, vector<128x128xf32>,
    %c0_92 = arith.constant 0 : index
    %c2_93 = arith.constant 2 : index
    %c0_94 = arith.constant 0 : index
    %c0_95 = arith.constant 0 : index
    %61 = vector.load %arg7[%c0_92, %c2_93, %c0_94, %c0_95] : memref<2x10x10x128xf32, #tpu.memory_space<vmem>>, vector<2x8x8x128xf32>
    %62 = vector.shape_cast %61 : vector<2x8x8x128xf32> to vector<128x128xf32>
    %c6 = arith.constant 6 : index
    %c0_96 = arith.constant 0 : index
    %c0_97 = arith.constant 0 : index
    %63 = vector.load %arg4[%c6, %c0_96, %c0_97] : memref<9x128x128xf32, #tpu.memory_space<vmem>>, vector<1x128x128xf32>
    %64 = vector.shape_cast %63 : vector<1x128x128xf32> to vector<128x128xf32>
    %cst_98 = arith.constant dense<0.000000e+00> : vector<128x128xf32>
    %65 = tpu.matmul %62, %64, %cst_98 {dimension_numbers = #tpu.dot_dimension_numbers<[1], [0], [0], [1], [0, 0, 1, 1], [], []>} : vector<128x128xf32>, vector<128x128xf32>, vector<128x128xf32> -> vector<128x128xf32>
    %c0_99 = arith.constant 0 : index
    %c0_100 = arith.constant 0 : index
    %66 = vector.load %arg8[%c0_99, %c0_100] : memref<128x128xf32, #tpu.memory_space<vmem>>, vector<128x128xf32>
    %67 = arith.addf %66, %65 : vector<128x128xf32>
    %c0_101 = arith.constant 0 : index
    %c0_102 = arith.constant 0 : index
    %68 = vector.load %arg8[%c0_101, %c0_102] : memref<128x128xf32, #tpu.memory_space<vmem>>, vector<128x128xf32>
    tpu.vector_store %arg8[%c0_101, %c0_102], %67 {strides = array<i32>} : memref<128x128xf32, #tpu.memory_space<vmem>>, vector<128x128xf32>,
    %c0_103 = arith.constant 0 : index
    %c2_104 = arith.constant 2 : index
    %c1_105 = arith.constant 1 : index
    %c0_106 = arith.constant 0 : index
    %69 = vector.load %arg7[%c0_103, %c2_104, %c1_105, %c0_106] : memref<2x10x10x128xf32, #tpu.memory_space<vmem>>, vector<2x8x8x128xf32>
    %70 = vector.shape_cast %69 : vector<2x8x8x128xf32> to vector<128x128xf32>
    %c7 = arith.constant 7 : index
    %c0_107 = arith.constant 0 : index
    %c0_108 = arith.constant 0 : index
    %71 = vector.load %arg4[%c7, %c0_107, %c0_108] : memref<9x128x128xf32, #tpu.memory_space<vmem>>, vector<1x128x128xf32>
    %72 = vector.shape_cast %71 : vector<1x128x128xf32> to vector<128x128xf32>
    %cst_109 = arith.constant dense<0.000000e+00> : vector<128x128xf32>
    %73 = tpu.matmul %70, %72, %cst_109 {dimension_numbers = #tpu.dot_dimension_numbers<[1], [0], [0], [1], [0, 0, 1, 1], [], []>} : vector<128x128xf32>, vector<128x128xf32>, vector<128x128xf32> -> vector<128x128xf32>
    %c0_110 = arith.constant 0 : index
    %c0_111 = arith.constant 0 : index
    %74 = vector.load %arg8[%c0_110, %c0_111] : memref<128x128xf32, #tpu.memory_space<vmem>>, vector<128x128xf32>
    %75 = arith.addf %74, %73 : vector<128x128xf32>
    %c0_112 = arith.constant 0 : index
    %c0_113 = arith.constant 0 : index
    %76 = vector.load %arg8[%c0_112, %c0_113] : memref<128x128xf32, #tpu.memory_space<vmem>>, vector<128x128xf32>
    tpu.vector_store %arg8[%c0_112, %c0_113], %75 {strides = array<i32>} : memref<128x128xf32, #tpu.memory_space<vmem>>, vector<128x128xf32>,
    %c0_114 = arith.constant 0 : index
    %c2_115 = arith.constant 2 : index
    %c2_116 = arith.constant 2 : index
    %c0_117 = arith.constant 0 : index
    %77 = vector.load %arg7[%c0_114, %c2_115, %c2_116, %c0_117] : memref<2x10x10x128xf32, #tpu.memory_space<vmem>>, vector<2x8x8x128xf32>
    %78 = vector.shape_cast %77 : vector<2x8x8x128xf32> to vector<128x128xf32>
    %c8 = arith.constant 8 : index
    %c0_118 = arith.constant 0 : index
    %c0_119 = arith.constant 0 : index
    %79 = vector.load %arg4[%c8, %c0_118, %c0_119] : memref<9x128x128xf32, #tpu.memory_space<vmem>>, vector<1x128x128xf32>
    %80 = vector.shape_cast %79 : vector<1x128x128xf32> to vector<128x128xf32>
    %cst_120 = arith.constant dense<0.000000e+00> : vector<128x128xf32>
    %81 = tpu.matmul %78, %80, %cst_120 {dimension_numbers = #tpu.dot_dimension_numbers<[1], [0], [0], [1], [0, 0, 1, 1], [], []>} : vector<128x128xf32>, vector<128x128xf32>, vector<128x128xf32> -> vector<128x128xf32>
    %c0_121 = arith.constant 0 : index
    %c0_122 = arith.constant 0 : index
    %82 = vector.load %arg8[%c0_121, %c0_122] : memref<128x128xf32, #tpu.memory_space<vmem>>, vector<128x128xf32>
    %83 = arith.addf %82, %81 : vector<128x128xf32>
    %c0_123 = arith.constant 0 : index
    %c0_124 = arith.constant 0 : index
    %84 = vector.load %arg8[%c0_123, %c0_124] : memref<128x128xf32, #tpu.memory_space<vmem>>, vector<128x128xf32>
    tpu.vector_store %arg8[%c0_123, %c0_124], %83 {strides = array<i32>} : memref<128x128xf32, #tpu.memory_space<vmem>>, vector<128x128xf32>,
    %c0_125 = arith.constant 0 : index
    %c0_126 = arith.constant 0 : index
    %85 = vector.load %arg8[%c0_125, %c0_126] : memref<128x128xf32, #tpu.memory_space<vmem>>, vector<128x128xf32>
    %c0_127 = arith.constant 0 : index
    %c0_128 = arith.constant 0 : index
    %86 = vector.load %arg5[%c0_127, %c0_128] : memref<1x128xf32, #tpu.memory_space<vmem>>, vector<1x128xf32>
    %87 = vector.broadcast %86 : vector<1x128xf32> to vector<128x128xf32>
    %88 = arith.addf %85, %87 : vector<128x128xf32>
    %cst_129 = arith.constant 0.000000e+00 : f32
    %89 = vector.broadcast %cst_129 : f32 to vector<128x128xf32>
    %90 = arith.maximumf %88, %89 : vector<128x128xf32>
    %91 = vector.shape_cast %90 : vector<128x128xf32> to vector<2x64x128xf32>
    %c0_130 = arith.constant 0 : index
    %c0_131 = arith.constant 0 : index
    %c0_132 = arith.constant 0 : index
    %92 = vector.load %arg6[%c0_130, %c0_131, %c0_132] : memref<2x64x128xf32, #tpu.memory_space<vmem>>, vector<2x64x128xf32>
    tpu.vector_store %arg6[%c0_130, %c0_131, %c0_132], %91 {strides = array<i32>} : memref<2x64x128xf32, #tpu.memory_space<vmem>>, vector<2x64x128xf32>,
    return
  }
  func.func @transform_0(%arg0: i32) -> (i32, i32, i32) {
    %c0_i32 = arith.constant 0 : i32
    %c0_i32_0 = arith.constant 0 : i32
    %c0_i32_1 = arith.constant 0 : i32
    return %arg0, %c0_i32, %c0_i32_0 : i32, i32, i32
  }
  func.func @transform_1(%arg0: i32) -> (i32, i32) {
    %c0_i32 = arith.constant 0 : i32
    %c0_i32_0 = arith.constant 0 : i32
    %c0_i32_1 = arith.constant 0 : i32
    return %c0_i32, %c0_i32_0 : i32, i32
  }
  func.func @transform_2(%arg0: i32) -> (i32, i32) {
    %c0_i32 = arith.constant 0 : i32
    %c0_i32_0 = arith.constant 0 : i32
    %c0_i32_1 = arith.constant 0 : i32
    return %c0_i32, %c0_i32_0 : i32, i32
  }
  func.func @transform_3(%arg0: i32) -> (i32, i32, i32) {
    %c0_i32 = arith.constant 0 : i32
    %c0_i32_0 = arith.constant 0 : i32
    %c0_i32_1 = arith.constant 0 : i32
    %c0_i32_2 = arith.constant 0 : i32
    return %c0_i32, %c0_i32_0, %c0_i32_1 : i32, i32, i32
  }
  func.func @transform_4(%arg0: i32) -> (i32, i32) {
    %c0_i32 = arith.constant 0 : i32
    %c0_i32_0 = arith.constant 0 : i32
    %c0_i32_1 = arith.constant 0 : i32
    return %c0_i32, %c0_i32_0 : i32, i32
  }
  func.func @transform_5(%arg0: i32) -> (i32, i32, i32) {
    %c0_i32 = arith.constant 0 : i32
    %c0_i32_0 = arith.constant 0 : i32
    %c0_i32_1 = arith.constant 0 : i32
    return %arg0, %c0_i32, %c0_i32_0 : i32, i32, i32
  }
}

</mosaic_0001>

<bundles_post_ra>
// kernel: tpu_custom_call.1
= control target key start
LH: loop header
LB: loop body
LE: loop exit
PB: predicated region body
PF: predicated region fallthrough
CT: control target
= control target key end

     0   :  { %10 = vsyncpa [#allocation5], 0  ;;  %s2402_s0 = inlined_call_operand.vmem [shape: f32[2,64,36], index: 0, kind: input, shape index: {}]   ;;  %s2403_s1 = inlined_call_operand.vmem [shape: f32[36,128], index: 1, kind: input, shape index: {}]   ;;  %s2404_s2 = inlined_call_operand.vmem [shape: f32[1,128], index: 2, kind: input, shape index: {}]   ;;  %s2405_s3 = inlined_call_operand.hbm [shape: f32[9,128,128], index: 3, kind: input, shape index: {}]   ;;  %s2406_s4 = inlined_call_operand.vmem [shape: f32[1,128], index: 4, kind: input, shape index: {}]   ;;  %s2407_s5 = inlined_call_operand.hbm [shape: f32[2,64,128], index: 5, kind: output, shape index: {}]  }
   0x1   :  { %11 = vsyncpa [#allocation6], 0  ;;  %s22_s20 = sshll.u32 %s2405_s3, 4  ;;  %s1728_s21 = smov [#allocation4]   ;;  %s23_s20 = int_to_ptr.hbm [resolvable:$true] %s22_s20 }
   0x2   :  { %s24_s22 = sshll.u32 %s1728_s21, 4  ;;  %s1729_s23 = smov 128   ;;  %s25_s22 = int_to_ptr.vmem [resolvable:$true] %s24_s22 }
   0x3   :  { %s1730_s24 = smov 8  }
   0x4   :  { %30 = dma.hbm_to_vmem [thread:$0]  %s23_s20, 18432, %s25_s22, [#allocation5], %s1729_s23, %s1729_s23, %s1730_s24  }
   0x5   :  { %1724 = dma.done.wait [#allocation5], 18432  }
   0x6   :  { %1725 = vsyncadd [#allocation5], 4294948864  ;;  %vm111_vm0 = vcmask 1043456   ;;  %v57_v0 = vld [vmem:[%s2403_s1 + $0x20] sm:$0xf]  ;;  %v56_v1 = vld [vmem:[%s2403_s1 + $0x18] sm:$0xff] }
   0x7   :  { %1615 = vmatpush.msk.msra.mxu0 %vm111_vm0, %v57_v0  ;;  %1632 = vmatpush.msk.msra.mxu3 %vm111_vm0, %v57_v0  ;;  %v55_v2 = vld [vmem:[%s2403_s1 + $0x10] sm:$0xff]  ;;  %v54_v3 = vld [vmem:[%s2403_s1 + $0x8] sm:$0xff]  ;;  %v53_v4 = vld [vmem:[%s2403_s1] sm:$0xff]  ;;  %vm62_vm1 = vcmask 293888   ;;  %v1731_v59 = vmov 0.0   ;;  %s1602_s20 = sshll.u32 %s2407_s5, 4  ;;  %s1603_s20 = int_to_ptr.hbm [resolvable:$true] %s1602_s20 }
   0x8   :  { %v37_v5 = vld [vmem:[%s2402_s0] sm:$0xff]  ;;  %v38_v6 = vld [vmem:[%s2402_s0 + $0x8] sm:$0xff]  ;;  %v39_v7 = vld [vmem:[%s2402_s0 + $0x10] sm:$0xff]  ;;  %180 = vst [vmem:[#allocation2] sm:$0xff] %v1731_v59 }
   0x9   :  { %127 = vmatpush.msra.mxu0 %v56_v1  ;;  %1633 = vmatpush.msra.mxu3 %v56_v1  ;;  %v40_v8 = vld [vmem:[%s2402_s0 + $0x18] sm:$0xff]  ;;  %v41_v9 = vld [vmem:[%s2402_s0 + $0x20] sm:$0xff]  ;;  %v42_v10 = vld [vmem:[%s2402_s0 + $0x28] sm:$0xff]  ;;  %189 = vst [vmem:[#allocation2] sm:$0x1] %v1731_v59 }
   0xa   :  { %v47_v11 = vld [vmem:[%s2402_s0 + $0x50] sm:$0xff]  ;;  %v277_v12 = vld [vmem:[#allocation4 + $0x78] sm:$0xff]  ;;  %v275_v16 = vld [vmem:[#allocation4 + $0x68] sm:$0xff]  ;;  %181 = vst [vmem:[#allocation2 + $0x8] sm:$0x3] %v1731_v59 }
   0xb   :  { %128 = vmatpush.msra.mxu0 %v55_v2  ;;  %1634 = vmatpush.msra.mxu3 %v55_v2  ;;  %v537_v13 = vld [vmem:[#allocation4 + $0x178] sm:$0xff]  ;;  %v276_v14 = vld [vmem:[#allocation4 + $0x70] sm:$0xff]  ;;  %v535_v17 = vld [vmem:[#allocation4 + $0x168] sm:$0xff]  ;;  %182 = vst [vmem:[#allocation2 + $0xa0] sm:$0xff] %v1731_v59 }
   0xc   :  { %278 = vmatpush.msra.mxu1 %v277_v12  ;;  %v536_v15 = vld [vmem:[#allocation4 + $0x170] sm:$0xff]  ;;  %1637 = vmatpush.msra.mxu2 %v277_v12  ;;  %v683_v18 = vld [vmem:[#allocation4 + $0x1f8] sm:$0xff]  ;;  %v274_v20 = vld [vmem:[#allocation4 + $0x60] sm:$0xff]  ;;  %183 = vst [vmem:[#allocation2 + $0xa8] sm:$0x3] %v1731_v59 }
   0xd   :  { %129 = vmatpush.msra.mxu0 %v54_v3  ;;  %1635 = vmatpush.msra.mxu3 %v54_v3  ;;  %v43_v19 = vld [vmem:[%s2402_s0 + $0x30] sm:$0xff]  ;;  %v48_v21 = vld [vmem:[%s2402_s0 + $0x58] sm:$0xff]  ;;  %v534_v23 = vld [vmem:[#allocation4 + $0x160] sm:$0xff]  ;;  %185 = vst [vmem:[#allocation2 + $0x90] sm:$0xff] %v1731_v59 }
   0xe   :  { %279 = vmatpush.msra.mxu1 %v276_v14  ;;  %1638 = vmatpush.msra.mxu2 %v276_v14  ;;  %v682_v22 = vld [vmem:[#allocation4 + $0x1f0] sm:$0xff]  ;;  %v273_v24 = vld [vmem:[#allocation4 + $0x58] sm:$0xff]  ;;  %v681_v25 = vld [vmem:[#allocation4 + $0x1e8] sm:$0xff]  ;;  %186 = vst [vmem:[#allocation2 + $0x98] sm:$0x3] %v1731_v59 }
   0xf   :  { %130 = vmatpush.msra.mxu0 %v53_v4  ;;  %1636 = vmatpush.msra.mxu3 %v53_v4  ;;  %v680_v26 = vld [vmem:[#allocation4 + $0x1e0] sm:$0xff]  ;;  %v533_v27 = vld [vmem:[#allocation4 + $0x158] sm:$0xff]  ;;  %v272_v28 = vld [vmem:[#allocation4 + $0x50] sm:$0xff]  ;;  %187 = vst [vmem:[#allocation2 + $0x130] sm:$0xff] %v1731_v59 }
  0x10   :  { %1616 = vmatmul.msk.f32.vlgmr.msra.gmra.mxu0 %vm62_vm1, %v37_v5  ;;  %1626 = vmatmul.msk.f32.vlgmr.msra.gmra.mxu3 %vm62_vm1, %v47_v11  ;;  %v679_v29 = vld [vmem:[#allocation4 + $0x1d8] sm:$0xff]  ;;  %v532_v30 = vld [vmem:[#allocation4 + $0x150] sm:$0xff]  ;;  %v271_v31 = vld [vmem:[#allocation4 + $0x48] sm:$0xff]  ;;  %188 = vst [vmem:[#allocation2 + $0x138] sm:$0x3] %v1731_v59 }
  0x11   :  { %538 = vmatpush.msrb.mxu3 %v537_v13  ;;  %684 = vmatpush.msrb.mxu0 %v683_v18  ;;  %v678_v32 = vld [vmem:[#allocation4 + $0x1d0] sm:$0xff]  ;;  %v44_v33 = vld [vmem:[%s2402_s0 + $0x38] sm:$0xff]  ;;  %v531_v34 = vld [vmem:[#allocation4 + $0x148] sm:$0xff]  ;;  %190 = vst [vmem:[#allocation2 + $0x10] sm:$0x1] %v1731_v59 }
  0x12   :  { %280 = vmatpush.msra.mxu1 %v275_v16  ;;  %1639 = vmatpush.msra.mxu2 %v275_v16  ;;  %v49_v35 = vld [vmem:[%s2402_s0 + $0x60] sm:$0xff]  ;;  %v677_v38 = vld [vmem:[#allocation4 + $0x1c8] sm:$0xff]  ;;  %v269_v39 = vld [vmem:[#allocation4 + $0x38] sm:$0xff]  ;;  %191 = vst [vmem:[#allocation2 + $0x20] sm:$0x1] %v1731_v59 }
  0x13   :  { %539 = vmatpush.msrb.mxu3 %v536_v15  ;;  %685 = vmatpush.msrb.mxu0 %v682_v22  ;;  %v270_v36 = vld [vmem:[#allocation4 + $0x40] sm:$0xff]  ;;  %v529_v40 = vld [vmem:[#allocation4 + $0x138] sm:$0xff]  ;;  %v268_v42 = vld [vmem:[#allocation4 + $0x30] sm:$0xff]  ;;  %192 = vst [vmem:[#allocation2 + $0x30] sm:$0x1] %v1731_v59 }
  0x14   :  { %281 = vmatpush.msra.mxu1 %v274_v20  ;;  %1640 = vmatpush.msra.mxu2 %v274_v20  ;;  %v530_v37 = vld [vmem:[#allocation4 + $0x140] sm:$0xff]  ;;  %v528_v43 = vld [vmem:[#allocation4 + $0x130] sm:$0xff]  ;;  %v675_v44 = vld [vmem:[#allocation4 + $0x1b8] sm:$0xff]  ;;  %193 = vst [vmem:[#allocation2 + $0x40] sm:$0x1] %v1731_v59 }
  0x15   :  { %540 = vmatpush.msrb.mxu3 %v535_v17  ;;  %686 = vmatpush.msrb.mxu0 %v681_v25  ;;  %v676_v41 = vld [vmem:[#allocation4 + $0x1c0] sm:$0xff]  ;;  %v267_v45 = vld [vmem:[#allocation4 + $0x28] sm:$0xff]  ;;  %v674_v51 = vld [vmem:[#allocation4 + $0x1b0] sm:$0xff]  ;;  %194 = vst [vmem:[#allocation2 + $0x50] sm:$0x1] %v1731_v59 }
  0x16   :  { %282 = vmatpush.msra.mxu1 %v273_v24  ;;  %1641 = vmatpush.msra.mxu2 %v273_v24  ;;  %v45_v46 = vld [vmem:[%s2402_s0 + $0x40] sm:$0xff]  ;;  %v527_v47 = vld [vmem:[#allocation4 + $0x128] sm:$0xff]  ;;  %v265_v52 = vld [vmem:[#allocation4 + $0x18] sm:$0xff]  ;;  %195 = vst [vmem:[#allocation2 + $0x60] sm:$0x1] %v1731_v59 }
  0x17   :  { %541 = vmatpush.msrb.mxu3 %v534_v23  ;;  %687 = vmatpush.msrb.mxu0 %v680_v26  ;;  %v50_v48 = vld [vmem:[%s2402_s0 + $0x68] sm:$0xff]  ;;  %v266_v49 = vld [vmem:[#allocation4 + $0x20] sm:$0xff]  ;;  %v525_v53 = vld [vmem:[#allocation4 + $0x118] sm:$0xff]  ;;  %196 = vst [vmem:[#allocation2 + $0x70] sm:$0x1] %v1731_v59 }
  0x18   :  { %1617 = vmatmul.msk.f32.gmra.mxu0 %vm62_vm1, %v38_v6  ;;  %1627 = vmatmul.msk.f32.gmra.mxu3 %vm62_vm1, %v48_v21  ;;  %v526_v50 = vld [vmem:[#allocation4 + $0x120] sm:$0xff]  ;;  %v264_v54 = vld [vmem:[#allocation4 + $0x10] sm:$0xff]  ;;  %v46_v56 = vld [vmem:[%s2402_s0 + $0x48] sm:$0xff]  ;;  %197 = vst [vmem:[#allocation2 + $0x80] sm:$0x1] %v1731_v59 }
  0x19   :  { %542 = vmatpush.msrb.mxu3 %v533_v27  ;;  %283 = vmatpush.msra.mxu1 %v272_v28  ;;  %v524_v55 = vld [vmem:[#allocation4 + $0x110] sm:$0xff]  ;;  %v52_v58 = vld [vmem:[%s2402_s0 + $0x78] sm:$0xff]  ;;  %v263_v60 = vld [vmem:[#allocation4 + $0x8] sm:$0xff]  ;;  %200 = vst [vmem:[#allocation2 + $0xb0] sm:$0x1] %v1731_v59 }
  0x1a   :  { %688 = vmatpush.msrb.mxu0 %v679_v29  ;;  %1642 = vmatpush.msra.mxu2 %v272_v28  ;;  %v51_v57 = vld [vmem:[%s2402_s0 + $0x70] sm:$0xff]  ;;  %v523_v61 = vld [vmem:[#allocation4 + $0x108] sm:$0xff]  ;;  %v262_v63 = vld [vmem:[#allocation4] sm:$0xff]  ;;  %201 = vst [vmem:[#allocation2 + $0xc0] sm:$0x1] %v1731_v59 }
  0x1b   :  { %543 = vmatpush.msrb.mxu3 %v532_v30  ;;  %284 = vmatpush.msra.mxu1 %v271_v31  ;;  %v673_v62 = vld [vmem:[#allocation4 + $0x1a8] sm:$0xff]  ;;  %v522_v0 = vld [vmem:[#allocation4 + $0x100] sm:$0xff]  ;;  %v671_v3 = vld [vmem:[#allocation4 + $0x198] sm:$0xff]  ;;  %202 = vst [vmem:[#allocation2 + $0xd0] sm:$0x1] %v1731_v59 }
  0x1c   :  { %689 = vmatpush.msrb.mxu0 %v678_v32  ;;  %1643 = vmatpush.msra.mxu2 %v271_v31  ;;  %v672_v1 = vld [vmem:[#allocation4 + $0x1a0] sm:$0xff]  ;;  %v670_v4 = vld [vmem:[#allocation4 + $0x190] sm:$0xff]  ;;  %203 = vst [vmem:[#allocation2 + $0xe0] sm:$0x1] %v1731_v59  ;;  %v669_v5 = vld [vmem:[#allocation4 + $0x188] sm:$0xff] }
  0x1d   :  { %544 = vmatpush.msrb.mxu3 %v531_v34  ;;  %285 = vmatpush.msra.mxu1 %v270_v36  ;;  %v246_v2 = vld [vmem:[#allocation2] sm:$0xff]  ;;  %204 = vst [vmem:[#allocation2 + $0xf0] sm:$0x1] %v1731_v59  ;;  %v829_v14 = vld [vmem:[#allocation4 + $0x278] sm:$0xff]  ;;  %v828_v15 = vld [vmem:[#allocation4 + $0x270] sm:$0xff] }
  0x1e   :  { %690 = vmatpush.msrb.mxu0 %v677_v38  ;;  %1644 = vmatpush.msra.mxu2 %v270_v36  ;;  %205 = vst [vmem:[#allocation2 + $0x100] sm:$0x1] %v1731_v59  ;;  %v668_v6 = vld [vmem:[#allocation4 + $0x180] sm:$0xff]  ;;  %v827_v16 = vld [vmem:[#allocation4 + $0x268] sm:$0xff]  ;;  %v825_v22 = vld [vmem:[#allocation4 + $0x258] sm:$0xff] }
  0x1f   :  { %545 = vmatpush.msrb.mxu3 %v530_v37  ;;  %286 = vmatpush.msra.mxu1 %v269_v39  ;;  %206 = vst [vmem:[#allocation2 + $0x110] sm:$0x1] %v1731_v59  ;;  %v826_v20 = vld [vmem:[#allocation4 + $0x260] sm:$0xff]  ;;  %v824_v23 = vld [vmem:[#allocation4 + $0x250] sm:$0xff]  ;;  %v823_v24 = vld [vmem:[#allocation4 + $0x248] sm:$0xff] }
  0x20   :  { %1618 = vmatmul.msk.f32.gmra.mxu0 %vm62_vm1, %v39_v7  ;;  %1628 = vmatmul.msk.f32.gmra.mxu3 %vm62_vm1, %v49_v35  ;;  %207 = vst [vmem:[#allocation2 + $0x120] sm:$0x1] %v1731_v59  ;;  %v1886_v7 = vld [vmem:[%s2404_s2] ss:$0 sm:$0xff]  ;;  %v821_v30 = vld [vmem:[#allocation4 + $0x238] sm:$0xff]  ;;  %v820_v31 = vld [vmem:[#allocation4 + $0x230] sm:$0xff] }
  0x21   :  { %546 = vmatpush.msrb.mxu3 %v529_v40  ;;  %691 = vmatpush.msrb.mxu0 %v676_v41  ;;  %210 = vst [vmem:[#allocation2 + $0x19] sm:$0x1] %v1731_v59  ;;  %v822_v28 = vld [vmem:[#allocation4 + $0x240] sm:$0xff]  ;;  %v819_v32 = vld [vmem:[#allocation4 + $0x228] sm:$0xff]  ;;  %v817_v38 = vld [vmem:[#allocation4 + $0x218] sm:$0xff] }
  0x22   :  { %287 = vmatpush.msra.mxu1 %v268_v42  ;;  %1645 = vmatpush.msra.mxu2 %v269_v39  ;;  %211 = vst [vmem:[#allocation2 + $0x29] sm:$0x1] %v1731_v59  ;;  %v818_v36 = vld [vmem:[#allocation4 + $0x220] sm:$0xff]  ;;  %v816_v39 = vld [vmem:[#allocation4 + $0x210] sm:$0xff]  ;;  %v391_v41 = vld [vmem:[#allocation4 + $0xf8] sm:$0xff] }
  0x23   :  { %547 = vmatpush.msrb.mxu3 %v528_v43  ;;  %692 = vmatpush.msrb.mxu0 %v675_v44  ;;  %212 = vst [vmem:[#allocation2 + $0x39] sm:$0x1] %v1731_v59 }
  0x24   :  { %288 = vmatpush.msra.mxu1 %v267_v45  ;;  %1646 = vmatpush.msra.mxu2 %v268_v42  ;;  %213 = vst [vmem:[#allocation2 + $0x49] sm:$0x1] %v1731_v59  ;;  %v815_v42 = vld [vmem:[#allocation4 + $0x208] sm:$0xff] }
  0x25   :  { %548 = vmatpush.msrb.mxu3 %v527_v47  ;;  %693 = vmatpush.msrb.mxu0 %v674_v51  ;;  %214 = vst [vmem:[#allocation2 + $0x59] sm:$0x1] %v1731_v59 }
  0x26   :  { %289 = vmatpush.msra.mxu1 %v266_v49  ;;  %1647 = vmatpush.msra.mxu2 %v267_v45  ;;  %215 = vst [vmem:[#allocation2 + $0x69] sm:$0x1] %v1731_v59 }
  0x27   :  { %549 = vmatpush.msrb.mxu3 %v526_v50  ;;  %694 = vmatpush.msrb.mxu0 %v673_v62  ;;  %216 = vst [vmem:[#allocation2 + $0x79] sm:$0x1] %v1731_v59  ;;  %v386_v62 = vld [vmem:[#allocation4 + $0xd0] sm:$0xff] }
  0x28   :  { %1619 = vmatmul.msk.f32.gmra.mxu0 %vm62_vm1, %v40_v8  ;;  %1629 = vmatmul.msk.f32.gmra.mxu3 %vm62_vm1, %v50_v48  ;;  %217 = vst [vmem:[#allocation2 + $0x89] sm:$0x1] %v1731_v59  ;;  %v390_v48 = vld [vmem:[#allocation4 + $0xf0] sm:$0xff] }
  0x29   :  { %290 = vmatpush.msra.mxu1 %v265_v52  ;;  %550 = vmatpush.msrb.mxu3 %v525_v53  ;;  %220 = vst [vmem:[#allocation2 + $0xb9] sm:$0x1] %v1731_v59 }
  0x2a   :  { %1648 = vmatpush.msra.mxu2 %v266_v49  ;;  %695 = vmatpush.msrb.mxu0 %v672_v1  ;;  %221 = vst [vmem:[#allocation2 + $0xc9] sm:$0x1] %v1731_v59  ;;  %v389_v49 = vld [vmem:[#allocation4 + $0xe8] sm:$0xff] }
  0x2b   :  { %291 = vmatpush.msra.mxu1 %v264_v54  ;;  %551 = vmatpush.msrb.mxu3 %v524_v55  ;;  %222 = vst [vmem:[#allocation2 + $0xd9] sm:$0x1] %v1731_v59 }
  0x2c   :  { %1649 = vmatpush.msra.mxu2 %v265_v52  ;;  %696 = vmatpush.msrb.mxu0 %v671_v3  ;;  %223 = vst [vmem:[#allocation2 + $0xe9] sm:$0x1] %v1731_v59 }
  0x2d   :  { %292 = vmatpush.msra.mxu1 %v263_v60  ;;  %552 = vmatpush.msrb.mxu3 %v523_v61  ;;  %224 = vst [vmem:[#allocation2 + $0xf9] sm:$0x1] %v1731_v59 }
  0x2e   :  { %1650 = vmatpush.msra.mxu2 %v264_v54  ;;  %697 = vmatpush.msrb.mxu0 %v670_v4  ;;  %225 = vst [vmem:[#allocation2 + $0x109] sm:$0x1] %v1731_v59  ;;  %v388_v54 = vld [vmem:[#allocation4 + $0xe0] sm:$0xff] }
  0x2f   :  { %293 = vmatpush.msra.mxu1 %v262_v63  ;;  %553 = vmatpush.msrb.mxu3 %v522_v0  ;;  %226 = vst [vmem:[#allocation2 + $0x119] sm:$0x1] %v1731_v59  ;;  %v385_v0 = vld [vmem:[#allocation4 + $0xc8] sm:$0xff] }
  0x30   :  { %1620 = vmatmul.msk.f32.gmra.mxu0 %vm62_vm1, %v41_v9  ;;  %1630 = vmatmul.msk.f32.gmra.mxu3 %vm62_vm1, %v51_v57  ;;  %227 = vst [vmem:[#allocation2 + $0x129] sm:$0x1] %v1731_v59 }
  0x31   :  { %1651 = vmatpush.msra.mxu2 %v263_v60  ;;  %294 = vmatmul.f32.vlgmr.msra.gmra.mxu1 %v246_v2  ;;  %209 = vst [vmem:[#allocation2 + $0x9] sm:$0x1] %v1731_v59 }
  0x32   :  { %698 = vmatpush.msrb.mxu0 %v669_v5  ;;  %198 = vst [vmem:[#allocation2 + $0x90] sm:$0x1] %v1731_v59  ;;  %830 = vmatpush.msrb.mxu1 %v829_v14 }
  0x33   :  { %1652 = vmatpush.msra.mxu2 %v262_v63  ;;  %199 = vst [vmem:[#allocation2 + $0xa0] sm:$0x1] %v1731_v59 }
  0x34   :  { %699 = vmatpush.msrb.mxu0 %v668_v6  ;;  %208 = vst [vmem:[#allocation2 + $0x130] sm:$0x1] %v1731_v59  ;;  %831 = vmatpush.msrb.mxu1 %v828_v15  ;;  %v384_v6 = vld [vmem:[#allocation4 + $0xc0] sm:$0xff] }
  0x35   :  { %218 = vst [vmem:[#allocation2 + $0x99] sm:$0x1] %v1731_v59  ;;  %392 = vmatpush.msrb.mxu2 %v391_v41  ;;  %v1117_v41 = vld [vmem:[#allocation4 + $0x350] sm:$0xff] }
  0x36   :  { %219 = vst [vmem:[#allocation2 + $0xa9] sm:$0x1] %v1731_v59  ;;  %832 = vmatpush.msrb.mxu1 %v827_v16 }
  0x37   :  { %228 = vst [vmem:[#allocation2 + $0x139] sm:$0x1] %v1731_v59  ;;  %393 = vmatpush.msrb.mxu2 %v390_v48 }
  0x38   :  { %1621 = vmatmul.msk.f32.gmra.mxu0 %vm62_vm1, %v42_v10  ;;  %1631 = vmatmul.msk.f32.gmra.mxu3 %vm62_vm1, %v52_v58  ;;  %v505_v13 = vld [vmem:[#allocation2 + $0x2] sm:$0xff] }
  0x39   :  { %833 = vmatpush.msrb.mxu1 %v826_v20  ;;  %394 = vmatpush.msrb.mxu2 %v389_v49  ;;  %v382_v20 = vld [vmem:[#allocation4 + $0xb0] sm:$0xff]  ;;  %v1116_v49 = vld [vmem:[#allocation4 + $0x348] sm:$0xff] }
  0x3a   :  { %v254_v40 = vld [vmem:[#allocation2 + $0xa0] sm:$0xff] }
  0x3b   :  { %834 = vmatpush.msrb.mxu1 %v825_v22  ;;  %318 = vmatmul.f32.vlgmr.msra.gmra.mxu2 %v254_v40 }
  0x3c   :  { %395 = vmatpush.msrb.mxu2 %v388_v54  ;;  %v1115_v54 = vld [vmem:[#allocation4 + $0x340] sm:$0xff] }
  0x3d   :  { %835 = vmatpush.msrb.mxu1 %v824_v23  ;;  %v513_v14 = vld [vmem:[#allocation2 + $0xa2] sm:$0xff] }
  0x3f   :  { %836 = vmatpush.msrb.mxu1 %v823_v24  ;;  %v381_v24 = vld [vmem:[#allocation4 + $0xa8] sm:$0xff] }
  0x40   :  { %1622 = vmatmul.msk.f32.gmra.mxu0 %vm62_vm1, %v43_v19  ;;  %554 = vmatmul.f32.vlgmr.msrb.gmra.mxu3 %v505_v13 }
  0x41   :  { %837 = vmatpush.msrb.mxu1 %v822_v28 }
  0x43   :  { %838 = vmatpush.msrb.mxu1 %v821_v30 }
  0x45   :  { %839 = vmatpush.msrb.mxu1 %v820_v31  ;;  %v1119_v31 = vld [vmem:[#allocation4 + $0x360] sm:$0xff] }
  0x47   :  { %840 = vmatpush.msrb.mxu1 %v819_v32  ;;  %v1118_v32 = vld [vmem:[#allocation4 + $0x358] sm:$0xff] }
  0x48   :  { %1623 = vmatmul.msk.f32.gmra.mxu0 %vm62_vm1, %v44_v33 }
  0x49   :  { %841 = vmatpush.msrb.mxu1 %v818_v36 }
  0x4b   :  { %842 = vmatpush.msrb.mxu1 %v817_v38  ;;  %v1267_v38 = vld [vmem:[#allocation4 + $0x3f0] sm:$0xff] }
  0x4d   :  { %843 = vmatpush.msrb.mxu1 %v816_v39  ;;  %v380_v39 = vld [vmem:[#allocation4 + $0xa0] sm:$0xff] }
  0x4f   :  { %844 = vmatpush.msrb.mxu1 %v815_v42  ;;  %v1266_v42 = vld [vmem:[#allocation4 + $0x3e8] sm:$0xff] }
  0x50   :  { %1624 = vmatmul.msk.f32.gmra.mxu0 %vm62_vm1, %v45_v46  ;;  %v814_v46 = vld [vmem:[#allocation4 + $0x200] sm:$0xff] }
  0x51   :  { %845 = vmatpush.msrb.mxu1 %v814_v46 }
  0x58   :  { %1625 = vmatmul.msk.f32.gmra.mxu0 %vm62_vm1, %v46_v56  ;;  %v387_v56 = vld [vmem:[#allocation4 + $0xd8] sm:$0xff] }
  0x59   :  { %396 = vmatpush.msrb.mxu2 %v387_v56 }
  0x5b   :  { %397 = vmatpush.msrb.mxu2 %v386_v62 }
  0x5d   :  { %398 = vmatpush.msrb.mxu2 %v385_v0  ;;  %v1263_v0 = vld [vmem:[#allocation4 + $0x3d0] sm:$0xff] }
  0x5f   :  { %399 = vmatpush.msrb.mxu2 %v384_v6 }
  0x8d   :  { %v132_v8 = vpop.f32.mrf.mxu0 }
  0x8e   :  { %v1893_v9 = vadd.f32 %v1886_v7, %v132_v8 }
  0x90   :  { %230 = vst [vmem:[#allocation2 + $0x11] sm:$0xff] %v1893_v9 }
  0x93   :  { %v162_v55 = vpop.f32.mrf.mxu3 }
  0x94   :  { %v1962_v57 = vadd.f32 %v1886_v7, %v162_v55  ;;  %v1264_v55 = vld [vmem:[#allocation4 + $0x3d8] sm:$0xff] }
  0x95   :  { %v135_v10 = vpop.f32.mrf.mxu0 }
  0x96   :  { %v1905_v11 = vadd.f32 %v1886_v7, %v135_v10  ;;  %240 = vst [vmem:[#allocation2 + $0xd1] sm:$0xff] %v1962_v57  ;;  %v383_v10 = vld [vmem:[#allocation4 + $0xb8] sm:$0xff] }
  0x97   :  { %v247_v12 = vld [vmem:[#allocation2 + $0x10] sm:$0xff]  ;;  %400 = vmatpush.msrb.mxu2 %v383_v10 }
  0x98   :  { %231 = vst [vmem:[#allocation2 + $0x21] sm:$0xff] %v1905_v11  ;;  %297 = vmatmul.f32.gmra.mxu1 %v247_v12  ;;  %700 = vmatmul.f32.vlgmr.msrb.gmra.mxu0 %v247_v12  ;;  %v506_v18 = vld [vmem:[#allocation2 + $0x12] sm:$0xff] }
  0x99   :  { %557 = vmatmul.f32.gmra.mxu3 %v506_v18  ;;  %v1121_v18 = vld [vmem:[#allocation4 + $0x370] sm:$0xff]  ;;  %401 = vmatpush.msrb.mxu2 %v382_v20  ;;  %v975_v20 = vld [vmem:[#allocation4 + $0x2f8] sm:$0xff] }
  0x9a   :  { %v1113_v10 = vld [vmem:[#allocation4 + $0x330] sm:$0xff] }
  0x9b   :  { %v165_v63 = vpop.f32.mrf.mxu3  ;;  %402 = vmatpush.msrb.mxu2 %v381_v24 }
  0x9c   :  { %v1977_v1 = vadd.f32 %v1886_v7, %v165_v63  ;;  %v1114_v63 = vld [vmem:[#allocation4 + $0x338] sm:$0xff] }
  0x9d   :  { %v138_v17 = vpop.f32.mrf.mxu0  ;;  %403 = vmatpush.msrb.mxu2 %v380_v39  ;;  %v2016_v46 = vld [vmem:[#allocation2 + $0xd0] sm:$0xff] }
  0x9e   :  { %v1910_v19 = vadd.f32 %v1886_v7, %v138_v17  ;;  %241 = vst [vmem:[#allocation2 + $0xe1] sm:$0xff] %v1977_v1  ;;  %v1122_v17 = vld [vmem:[#allocation4 + $0x378] sm:$0xff]  ;;  %v974_v39 = vld [vmem:[#allocation4 + $0x2f0] sm:$0xff] }
  0x9f   :  { %v1912_v21 = vld [vmem:[#allocation2 + $0x20] sm:$0xff]  ;;  %1123 = vmatpush.msra.mxu3 %v1122_v17 }
  0xa0   :  { %232 = vst [vmem:[#allocation2 + $0x31] sm:$0xff] %v1910_v19  ;;  %300 = vmatmul.f32.gmra.mxu1 %v1912_v21  ;;  %703 = vmatmul.f32.gmra.mxu0 %v1912_v21  ;;  %v1917_v26 = vld [vmem:[#allocation2 + $0x22] sm:$0xff] }
  0xa1   :  { %560 = vmatmul.f32.gmra.mxu3 %v1917_v26  ;;  %v1111_v17 = vld [vmem:[#allocation4 + $0x320] sm:$0xff] }
  0xa2   :  { %1124 = vmatpush.msra.mxu3 %v1121_v18  ;;  %v1260_v18 = vld [vmem:[#allocation4 + $0x3b8] sm:$0xff] }
  0xa3   :  { %v168_v8 = vpop.f32.mrf.mxu3 }
  0xa4   :  { %v1992_v12 = vadd.f32 %v1886_v7, %v168_v8  ;;  %v2030_v8 = vld [vmem:[#allocation2 + $0xd2] sm:$0xff] }
  0xa5   :  { %v141_v25 = vpop.f32.mrf.mxu0  ;;  %v2028_v6 = vld [vmem:[#allocation2 + $0xe0] sm:$0xff] }
  0xa6   :  { %v1920_v27 = vadd.f32 %v1886_v7, %v141_v25  ;;  %242 = vst [vmem:[#allocation2 + $0xf1] sm:$0xff] %v1992_v12  ;;  %v1120_v25 = vld [vmem:[#allocation4 + $0x368] sm:$0xff] }
  0xa7   :  { %v1922_v29 = vld [vmem:[#allocation2 + $0x30] sm:$0xff]  ;;  %1125 = vmatpush.msra.mxu3 %v1120_v25  ;;  %v2038_v24 = vld [vmem:[#allocation2 + $0xe2] sm:$0xff]  ;;  %v1110_v25 = vld [vmem:[#allocation4 + $0x318] sm:$0xff] }
  0xa8   :  { %233 = vst [vmem:[#allocation2 + $0x41] sm:$0xff] %v1920_v27  ;;  %303 = vmatmul.f32.gmra.mxu1 %v1922_v29  ;;  %706 = vmatmul.f32.gmra.mxu0 %v1922_v29  ;;  %v1928_v34 = vld [vmem:[#allocation2 + $0x32] sm:$0xff] }
  0xa9   :  { %563 = vmatmul.f32.gmra.mxu3 %v1928_v34 }
  0xaa   :  { %1126 = vmatpush.msra.mxu3 %v1119_v31  ;;  %v1259_v31 = vld [vmem:[#allocation4 + $0x3b0] sm:$0xff] }
  0xab   :  { %v171_v22 = vpop.f32.mrf.mxu3 }
  0xac   :  { %v2001_v23 = vadd.f32 %v1886_v7, %v171_v22  ;;  %1127 = vmatpush.msra.mxu3 %v1118_v32  ;;  %v1109_v32 = vld [vmem:[#allocation4 + $0x310] sm:$0xff] }
  0xad   :  { %v144_v33 = vpop.f32.mrf.mxu0  ;;  %v2036_v22 = vld [vmem:[#allocation2 + $0xf0] sm:$0xff] }
  0xae   :  { %v1931_v35 = vadd.f32 %v1886_v7, %v144_v33  ;;  %243 = vst [vmem:[#allocation2 + $0x101] sm:$0xff] %v2001_v23  ;;  %v1268_v33 = vld [vmem:[#allocation4 + $0x3f8] sm:$0xff]  ;;  %1128 = vmatpush.msra.mxu3 %v1117_v41 }
  0xaf   :  { %v1933_v37 = vld [vmem:[#allocation2 + $0x40] sm:$0xff]  ;;  %1269 = vmatpush.msra.mxu0 %v1268_v33  ;;  %v1258_v33 = vld [vmem:[#allocation4 + $0x3a8] sm:$0xff] }
  0xb0   :  { %234 = vst [vmem:[#allocation2 + $0x51] sm:$0xff] %v1931_v35  ;;  %306 = vmatmul.f32.gmra.mxu1 %v1933_v37  ;;  %709 = vmatmul.f32.gmra.mxu0 %v1933_v37  ;;  %v1939_v44 = vld [vmem:[#allocation2 + $0x42] sm:$0xff] }
  0xb1   :  { %566 = vmatmul.f32.gmra.mxu3 %v1939_v44  ;;  %1270 = vmatpush.msra.mxu0 %v1267_v38  ;;  %v1257_v38 = vld [vmem:[#allocation4 + $0x3a0] sm:$0xff] }
  0xb2   :  { %1129 = vmatpush.msra.mxu3 %v1116_v49  ;;  %v1256_v49 = vld [vmem:[#allocation4 + $0x398] sm:$0xff] }
  0xb3   :  { %v174_v36 = vpop.f32.mrf.mxu3  ;;  %1271 = vmatpush.msra.mxu0 %v1266_v42  ;;  %v2046_v42 = vld [vmem:[#allocation2 + $0xf2] sm:$0xff] }
  0xb4   :  { %v2013_v40 = vadd.f32 %v1886_v7, %v174_v36  ;;  %1130 = vmatpush.msra.mxu3 %v1115_v54  ;;  %v1108_v36 = vld [vmem:[#allocation4 + $0x308] sm:$0xff] }
  0xb5   :  { %v147_v43 = vpop.f32.mrf.mxu0  ;;  %v2044_v41 = vld [vmem:[#allocation2 + $0x100] sm:$0xff]  ;;  %v1254_v54 = vld [vmem:[#allocation4 + $0x388] sm:$0xff] }
  0xb6   :  { %v1942_v45 = vadd.f32 %v1886_v7, %v147_v43  ;;  %244 = vst [vmem:[#allocation2 + $0x111] sm:$0xff] %v2013_v40  ;;  %v379_v43 = vld [vmem:[#allocation4 + $0x98] sm:$0xff]  ;;  %1131 = vmatpush.msra.mxu3 %v1114_v63  ;;  %v1253_v63 = vld [vmem:[#allocation4 + $0x380] sm:$0xff] }
  0xb7   :  { %v1944_v47 = vld [vmem:[#allocation2 + $0x50] sm:$0xff]  ;;  %404 = vmatpush.msrb.mxu2 %v379_v43  ;;  %v1107_v43 = vld [vmem:[#allocation4 + $0x300] sm:$0xff] }
  0xb8   :  { %235 = vst [vmem:[#allocation2 + $0x61] sm:$0xff] %v1942_v45  ;;  %309 = vmatmul.f32.gmra.mxu1 %v1944_v47  ;;  %712 = vmatmul.f32.gmra.mxu0 %v1944_v47  ;;  %v1950_v51 = vld [vmem:[#allocation2 + $0x52] sm:$0xff] }
  0xb9   :  { %569 = vmatmul.f32.gmra.mxu3 %v1950_v51 }
  0xba   :  { %1132 = vmatpush.msra.mxu3 %v1113_v10  ;;  %v2060_v10 = vpop.f32.mrf.mxu1 }
  0xbb   :  { %v177_v56 = vpop.f32.mrf.mxu3 }
  0xbc   :  { %v2025_v62 = vadd.f32 %v1886_v7, %v177_v56 }
  0xbd   :  { %v150_v50 = vpop.f32.mrf.mxu0  ;;  %v2052_v56 = vld [vmem:[#allocation2 + $0x110] sm:$0xff] }
  0xbe   :  { %v1953_v52 = vadd.f32 %v1886_v7, %v150_v50  ;;  %v1265_v50 = vld [vmem:[#allocation4 + $0x3e0] sm:$0xff]  ;;  %245 = vst [vmem:[#allocation2 + $0x121] sm:$0xff] %v2025_v62 }
  0xbf   :  { %v1955_v53 = vld [vmem:[#allocation2 + $0x60] sm:$0xff]  ;;  %1272 = vmatpush.msra.mxu0 %v1265_v50  ;;  %v1255_v50 = vld [vmem:[#allocation4 + $0x390] sm:$0xff] }
  0xc0   :  { %236 = vst [vmem:[#allocation2 + $0x71] sm:$0xff] %v1953_v52  ;;  %312 = vmatmul.f32.gmra.mxu1 %v1955_v53  ;;  %715 = vmatmul.f32.gmra.mxu0 %v1955_v53  ;;  %v1965_v59 = vld [vmem:[#allocation2 + $0x62] sm:$0xff] }
  0xc1   :  { %572 = vmatmul.f32.gmra.mxu3 %v1965_v59  ;;  %1273 = vmatpush.msra.mxu0 %v1264_v55  ;;  %v973_v55 = vld [vmem:[#allocation4 + $0x2e8] sm:$0xff] }
  0xc3   :  { %1274 = vmatpush.msra.mxu0 %v1263_v0  ;;  %v1414_v0 = vld [vmem:[#allocation4 + $0x478] sm:$0xff] }
  0xc4   :  { %1415 = vmatpush.msra.mxu1 %v1414_v0 }
  0xc5   :  { %v153_v58 = vpop.f32.mrf.mxu0 }
  0xc6   :  { %v1968_v60 = vadd.f32 %v1886_v7, %v153_v58  ;;  %v378_v58 = vld [vmem:[#allocation4 + $0x90] sm:$0xff] }
  0xc7   :  { %v1970_v61 = vld [vmem:[#allocation2 + $0x70] sm:$0xff]  ;;  %405 = vmatpush.msrb.mxu2 %v378_v58  ;;  %v2054_v58 = vld [vmem:[#allocation2 + $0x102] sm:$0xff] }
  0xc8   :  { %237 = vst [vmem:[#allocation2 + $0x81] sm:$0xff] %v1968_v60  ;;  %315 = vmatmul.f32.gmra.mxu1 %v1970_v61  ;;  %718 = vmatmul.f32.gmra.mxu0 %v1970_v61  ;;  %v1980_v3 = vld [vmem:[#allocation2 + $0x72] sm:$0xff] }
  0xc9   :  { %575 = vmatmul.f32.gmra.mxu3 %v1980_v3 }
  0xcd   :  { %v156_v2 = vpop.f32.mrf.mxu0 }
  0xce   :  { %v1983_v4 = vadd.f32 %v1886_v7, %v156_v2  ;;  %v377_v2 = vld [vmem:[#allocation4 + $0x88] sm:$0xff] }
  0xcf   :  { %v1985_v5 = vld [vmem:[#allocation2 + $0x80] sm:$0xff]  ;;  %406 = vmatpush.msrb.mxu2 %v377_v2 }
  0xd0   :  { %238 = vst [vmem:[#allocation2 + $0xb1] sm:$0xff] %v1983_v4  ;;  %721 = vmatmul.f32.gmra.mxu0 %v1985_v5  ;;  %846 = vmatmul.f32.vlgmr.msrb.gmra.mxu1 %v1893_v9  ;;  %v972_v2 = vld [vmem:[#allocation4 + $0x2e0] sm:$0xff] }
  0xd1   :  { %578 = vmatmul.f32.gmra.mxu3 %v513_v14  ;;  %v1261_v14 = vld [vmem:[#allocation4 + $0x3c0] sm:$0xff] }
  0xd5   :  { %v159_v13 = vpop.f32.mrf.mxu0 }
  0xd6   :  { %v1996_v15 = vadd.f32 %v1886_v7, %v159_v13  ;;  %v1262_v13 = vld [vmem:[#allocation4 + $0x3c8] sm:$0xff] }
  0xd7   :  { %v255_v16 = vld [vmem:[#allocation2 + $0xb0] sm:$0xff]  ;;  %v1112_v7 = vld [vmem:[#allocation4 + $0x328] sm:$0xff]  ;;  %1275 = vmatpush.msra.mxu0 %v1262_v13 }
  0xd8   :  { %239 = vst [vmem:[#allocation2 + $0xc1] sm:$0xff] %v1996_v15  ;;  %321 = vmatmul.f32.gmra.mxu2 %v255_v16  ;;  %724 = vmatmul.f32.gmra.mxu0 %v255_v16  ;;  %v2004_v28 = vld [vmem:[#allocation2 + $0xb2] sm:$0xff]  ;;  %v376_v16 = vld [vmem:[#allocation4 + $0x80] sm:$0xff] }
  0xd9   :  { %849 = vmatmul.f32.gmra.mxu1 %v1905_v11  ;;  %581 = vmatmul.f32.gmra.mxu3 %v2004_v28  ;;  %v359_v13 = vld [vmem:[#allocation2 + $0x1] sm:$0xff] }
  0xda   :  { %407 = vmatpush.msrb.mxu2 %v376_v16  ;;  %1133 = vmatpush.msra.mxu3 %v1112_v7  ;;  %v2062_v7 = vld [vmem:[#allocation2 + $0x120] sm:$0xff]  ;;  %v1413_v16 = vld [vmem:[#allocation4 + $0x470] sm:$0xff] }
  0xdb   :  { %1276 = vmatpush.msra.mxu0 %v1261_v14  ;;  %v2064_v14 = vld [vmem:[#allocation2 + $0x112] sm:$0xff]  ;;  %1416 = vmatpush.msra.mxu1 %v1413_v16 }
  0xdc   :  { %976 = vmatpush.msra.mxu2 %v975_v20  ;;  %1134 = vmatpush.msra.mxu3 %v1111_v17  ;;  %v971_v17 = vld [vmem:[#allocation4 + $0x2d8] sm:$0xff]  ;;  %v1412_v20 = vld [vmem:[#allocation4 + $0x468] sm:$0xff] }
  0xdd   :  { %1277 = vmatpush.msra.mxu0 %v1260_v18  ;;  %1417 = vmatpush.msra.mxu1 %v1412_v20 }
  0xde   :  { %1135 = vmatpush.msra.mxu3 %v1110_v25  ;;  %977 = vmatpush.msra.mxu2 %v974_v39  ;;  %v1411_v25 = vld [vmem:[#allocation4 + $0x460] sm:$0xff]  ;;  %v1405_v39 = vld [vmem:[#allocation4 + $0x430] sm:$0xff] }
  0xdf   :  { %v2006_v30 = vld [vmem:[#allocation2 + $0xc0] sm:$0xff]  ;;  %1278 = vmatpush.msra.mxu0 %v1259_v31  ;;  %v970_v31 = vld [vmem:[#allocation4 + $0x2d0] sm:$0xff]  ;;  %1418 = vmatpush.msra.mxu1 %v1411_v25 }
  0xe0   :  { %324 = vmatmul.f32.gmra.mxu2 %v2006_v30  ;;  %727 = vmatmul.f32.gmra.mxu0 %v2006_v30  ;;  %v2018_v48 = vld [vmem:[#allocation2 + $0xc2] sm:$0xff] }
  0xe1   :  { %852 = vmatmul.f32.gmra.mxu1 %v1910_v19  ;;  %584 = vmatmul.f32.gmra.mxu3 %v2018_v48 }
  0xe2   :  { %1136 = vmatpush.msra.mxu3 %v1109_v32  ;;  %1279 = vmatpush.msra.mxu0 %v1258_v33  ;;  %v1409_v32 = vld [vmem:[#allocation4 + $0x450] sm:$0xff]  ;;  %v1408_v33 = vld [vmem:[#allocation4 + $0x448] sm:$0xff] }
  0xe3   :  { %978 = vmatpush.msra.mxu2 %v973_v55  ;;  %v1401_v55 = vld [vmem:[#allocation4 + $0x410] sm:$0xff] }
  0xe4   :  { %1137 = vmatpush.msra.mxu3 %v1108_v36  ;;  %1280 = vmatpush.msra.mxu0 %v1257_v38  ;;  %v969_v36 = vld [vmem:[#allocation4 + $0x2c8] sm:$0xff] }
  0xe5   :  { %979 = vmatpush.msra.mxu2 %v972_v2  ;;  %v964_v2 = vld [vmem:[#allocation4 + $0x2a0] sm:$0xff] }
  0xe6   :  { %1138 = vmatpush.msra.mxu3 %v1107_v43  ;;  %1281 = vmatpush.msra.mxu0 %v1256_v49  ;;  %v968_v43 = vld [vmem:[#allocation4 + $0x2c0] sm:$0xff]  ;;  %v1404_v49 = vld [vmem:[#allocation4 + $0x428] sm:$0xff] }
  0xe7   :  { %980 = vmatpush.msra.mxu2 %v971_v17  ;;  %v1097_v17 = vld [vmem:[#allocation2 + $0x90] sm:$0xff] }
  0xe8   :  { %327 = vmatmul.f32.gmra.mxu2 %v2016_v46  ;;  %730 = vmatmul.f32.gmra.mxu0 %v2016_v46 }
  0xe9   :  { %855 = vmatmul.f32.gmra.mxu1 %v1920_v27  ;;  %587 = vmatmul.f32.gmra.mxu3 %v2030_v8 }
  0xea   :  { %1282 = vmatpush.msra.mxu0 %v1255_v50  ;;  %1653 = vmatpush.msrb.mxu3 %v1414_v0 }
  0xeb   :  { %981 = vmatpush.msra.mxu2 %v970_v31 }
  0xec   :  { %1283 = vmatpush.msra.mxu0 %v1254_v54  ;;  %1654 = vmatpush.msrb.mxu3 %v1413_v16  ;;  %v967_v54 = vld [vmem:[#allocation4 + $0x2b8] sm:$0xff] }
  0xed   :  { %982 = vmatpush.msra.mxu2 %v969_v36  ;;  %v1243_v16 = vld [vmem:[#allocation2 + $0x91] sm:$0xff] }
  0xee   :  { %1284 = vmatpush.msra.mxu0 %v1253_v63  ;;  %1655 = vmatpush.msrb.mxu3 %v1412_v20  ;;  %v966_v63 = vld [vmem:[#allocation4 + $0x2b0] sm:$0xff] }
  0xef   :  { %983 = vmatpush.msra.mxu2 %v968_v43 }
  0xf0   :  { %330 = vmatmul.f32.gmra.mxu2 %v2028_v6  ;;  %733 = vmatmul.f32.gmra.mxu0 %v2028_v6 }
  0xf1   :  { %858 = vmatmul.f32.gmra.mxu1 %v1931_v35  ;;  %590 = vmatmul.f32.gmra.mxu3 %v2038_v24 }
  0xf2   :  { %1656 = vmatpush.msrb.mxu3 %v1411_v25  ;;  %984 = vmatpush.msra.mxu2 %v967_v54  ;;  %v944_v54 = vld [vmem:[#allocation2 + $0x22] sm:$0xff] }
  0xf4   :  { %985 = vmatpush.msra.mxu2 %v966_v63 }
  0xf8   :  { %333 = vmatmul.f32.gmra.mxu2 %v2036_v22  ;;  %736 = vmatmul.f32.gmra.mxu0 %v2036_v22 }
  0xf9   :  { %861 = vmatmul.f32.gmra.mxu1 %v1942_v45  ;;  %593 = vmatmul.f32.gmra.mxu3 %v2046_v42 }
 0x100   :  { %336 = vmatmul.f32.gmra.mxu2 %v2044_v41  ;;  %739 = vmatmul.f32.gmra.mxu0 %v2044_v41 }
 0x101   :  { %864 = vmatmul.f32.gmra.mxu1 %v1953_v52  ;;  %596 = vmatmul.f32.gmra.mxu3 %v2054_v58 }
 0x108   :  { %339 = vmatmul.f32.gmra.mxu2 %v2052_v56  ;;  %742 = vmatmul.f32.gmra.mxu0 %v2052_v56 }
 0x109   :  { %867 = vmatmul.f32.gmra.mxu1 %v1968_v60  ;;  %599 = vmatmul.f32.gmra.mxu3 %v2064_v14 }
 0x110   :  { %408 = vmatmul.f32.vlgmr.msrb.gmra.mxu2 %v359_v13  ;;  %745 = vmatmul.f32.gmra.mxu0 %v2062_v7  ;;  %v2111_v13 = vpop.f32.mrf.mxu3 }
 0x111   :  { %870 = vmatmul.f32.gmra.mxu1 %v1983_v4  ;;  %1139 = vmatmul.f32.vlgmr.msra.gmra.mxu3 %v1912_v21  ;;  %v1410_v21 = vld [vmem:[#allocation4 + $0x458] sm:$0xff] }
 0x112   :  { %1419 = vmatpush.msra.mxu1 %v1410_v21  ;;  %1657 = vmatpush.msrb.mxu3 %v1410_v21 }
 0x114   :  { %1420 = vmatpush.msra.mxu1 %v1409_v32  ;;  %1658 = vmatpush.msrb.mxu3 %v1409_v32 }
 0x115   :  { %v2069_v18 = vpop.f32.mrf.mxu1 }
 0x116   :  { %1421 = vmatpush.msra.mxu1 %v1408_v33  ;;  %1659 = vmatpush.msrb.mxu3 %v1408_v33 }
 0x118   :  { %411 = vmatmul.f32.gmra.mxu2 %v1893_v9  ;;  %1285 = vmatmul.f32.vlgmr.msra.gmra.mxu0 %v1905_v11 }
 0x119   :  { %873 = vmatmul.f32.gmra.mxu1 %v1996_v15  ;;  %1142 = vmatmul.f32.gmra.mxu3 %v1922_v29  ;;  %v1406_v29 = vld [vmem:[#allocation4 + $0x438] sm:$0xff] }
 0x11c   :  { %v2120_v25 = vpop.f32.mrf.mxu3 }
 0x11d   :  { %v2078_v9 = vpop.f32.mrf.mxu1 }
 0x120   :  { %414 = vmatmul.f32.gmra.mxu2 %v1905_v11  ;;  %1288 = vmatmul.f32.gmra.mxu0 %v1910_v19  ;;  %v1407_v11 = vld [vmem:[#allocation4 + $0x440] sm:$0xff] }
 0x121   :  { %876 = vmatmul.f32.gmra.mxu1 %v1962_v57  ;;  %1145 = vmatmul.f32.gmra.mxu3 %v1933_v37  ;;  %v1402_v37 = vld [vmem:[#allocation4 + $0x418] sm:$0xff] }
 0x122   :  { %1422 = vmatpush.msra.mxu1 %v1407_v11  ;;  %1660 = vmatpush.msrb.mxu3 %v1407_v11 }
 0x124   :  { %1423 = vmatpush.msra.mxu1 %v1406_v29  ;;  %1661 = vmatpush.msrb.mxu3 %v1406_v29  ;;  %v2134_v33 = vpop.f32.mrf.mxu3 }
 0x125   :  { %v2085_v38 = vpop.f32.mrf.mxu1 }
 0x126   :  { %1424 = vmatpush.msra.mxu1 %v1405_v39  ;;  %1662 = vmatpush.msrb.mxu3 %v1405_v39  ;;  %v1388_v39 = vld [vmem:[#allocation2 + $0x82] sm:$0xff] }
 0x128   :  { %417 = vmatmul.f32.gmra.mxu2 %v1910_v19  ;;  %1291 = vmatmul.f32.gmra.mxu0 %v1920_v27  ;;  %v1403_v19 = vld [vmem:[#allocation4 + $0x420] sm:$0xff] }
 0x129   :  { %879 = vmatmul.f32.gmra.mxu1 %v1977_v1  ;;  %1148 = vmatmul.f32.gmra.mxu3 %v1944_v47  ;;  %v1399_v47 = vld [vmem:[#allocation4 + $0x400] sm:$0xff] }
 0x12a   :  { %1425 = vmatpush.msra.mxu1 %v1404_v49  ;;  %1663 = vmatpush.msrb.mxu3 %v1404_v49 }
 0x12c   :  { %1426 = vmatpush.msra.mxu1 %v1403_v19  ;;  %1664 = vmatpush.msrb.mxu3 %v1403_v19  ;;  %v2148_v36 = vpop.f32.mrf.mxu3  ;;  %v943_v19 = vld [vmem:[#allocation2 + $0x12] sm:$0xff] }
 0x12d   :  { %v2091_v50 = vpop.f32.mrf.mxu1 }
 0x12e   :  { %1427 = vmatpush.msra.mxu1 %v1402_v37  ;;  %1665 = vmatpush.msrb.mxu3 %v1402_v37 }
 0x130   :  { %420 = vmatmul.f32.gmra.mxu2 %v1920_v27  ;;  %1294 = vmatmul.f32.gmra.mxu0 %v1931_v35  ;;  %v1400_v27 = vld [vmem:[#allocation4 + $0x408] sm:$0xff] }
 0x131   :  { %882 = vmatmul.f32.gmra.mxu1 %v1992_v12  ;;  %1151 = vmatmul.f32.gmra.mxu3 %v1955_v53 }
 0x132   :  { %1428 = vmatpush.msra.mxu1 %v1401_v55  ;;  %1666 = vmatpush.msrb.mxu3 %v1401_v55 }
 0x134   :  { %1429 = vmatpush.msra.mxu1 %v1400_v27  ;;  %1667 = vmatpush.msrb.mxu3 %v1400_v27 }
 0x135   :  { %v2097_v0 = vpop.f32.mrf.mxu1 }
 0x136   :  { %1430 = vmatpush.msra.mxu1 %v1399_v47  ;;  %1668 = vmatpush.msrb.mxu3 %v1399_v47 }
 0x138   :  { %423 = vmatmul.f32.gmra.mxu2 %v1931_v35  ;;  %1297 = vmatmul.f32.gmra.mxu0 %v1942_v45  ;;  %v965_v35 = vld [vmem:[#allocation4 + $0x2a8] sm:$0xff] }
 0x139   :  { %885 = vmatmul.f32.gmra.mxu1 %v2001_v23  ;;  %1154 = vmatmul.f32.gmra.mxu3 %v1970_v61  ;;  %v367_v61 = vld [vmem:[#allocation2 + $0xa1] sm:$0xff] }
 0x13a   :  { %986 = vmatpush.msra.mxu2 %v965_v35 }
 0x13c   :  { %987 = vmatpush.msra.mxu2 %v964_v2  ;;  %v946_v2 = vld [vmem:[#allocation2 + $0x42] sm:$0xff] }
 0x13d   :  { %v2105_v53 = vpop.f32.mrf.mxu1 }
 0x140   :  { %426 = vmatmul.f32.gmra.mxu2 %v1942_v45  ;;  %1300 = vmatmul.f32.gmra.mxu0 %v1953_v52  ;;  %v2109_v45 = vpop.f32.mrf.mxu0 }
 0x141   :  { %888 = vmatmul.f32.gmra.mxu1 %v2013_v40  ;;  %1157 = vmatmul.f32.gmra.mxu3 %v1985_v5  ;;  %v963_v5 = vld [vmem:[#allocation4 + $0x298] sm:$0xff] }
 0x142   :  { %988 = vmatpush.msra.mxu2 %v963_v5 }
 0x148   :  { %429 = vmatmul.f32.gmra.mxu2 %v1953_v52  ;;  %1303 = vmatmul.f32.gmra.mxu0 %v1968_v60  ;;  %v2114_v52 = vpop.f32.mrf.mxu2  ;;  %v2116_v60 = vpop.f32.mrf.mxu1 }
 0x149   :  { %891 = vmatmul.f32.gmra.mxu1 %v2025_v62  ;;  %1160 = vmatmul.f32.gmra.mxu3 %v1097_v17  ;;  %v2118_v20 = vpop.f32.mrf.mxu0 }
 0x150   :  { %432 = vmatmul.f32.gmra.mxu2 %v367_v61  ;;  %1306 = vmatmul.f32.gmra.mxu0 %v1243_v16  ;;  %v2128_v21 = vpop.f32.mrf.mxu1 }
 0x151   :  { %1431 = vmatmul.f32.vlgmr.msra.gmra.mxu1 %v1917_v26  ;;  %1163 = vmatmul.f32.gmra.mxu3 %v2006_v30  ;;  %v962_v26 = vld [vmem:[#allocation4 + $0x290] sm:$0xff]  ;;  %v2130_v32 = vpop.f32.mrf.mxu0 }
 0x152   :  { %989 = vmatpush.msra.mxu2 %v962_v26  ;;  %v947_v26 = vld [vmem:[#allocation2 + $0x52] sm:$0xff] }
 0x158   :  { %435 = vmatmul.f32.gmra.mxu2 %v1983_v4  ;;  %1309 = vmatmul.f32.gmra.mxu0 %v1996_v15  ;;  %v2140_v30 = vpop.f32.mrf.mxu1 }
 0x159   :  { %1434 = vmatmul.f32.gmra.mxu1 %v1928_v34  ;;  %1166 = vmatmul.f32.gmra.mxu3 %v2016_v46  ;;  %v961_v34 = vld [vmem:[#allocation4 + $0x288] sm:$0xff] }
 0x15a   :  { %990 = vmatpush.msra.mxu2 %v961_v34 }
 0x15b   :  { %v2126_v31 = vpop.f32.mrf.mxu2 }
 0x160   :  { %438 = vmatmul.f32.gmra.mxu2 %v1996_v15  ;;  %1312 = vmatmul.f32.gmra.mxu0 %v1962_v57  ;;  %v2146_v15 = vpop.f32.mrf.mxu0  ;;  %v2154_v11 = vpop.f32.mrf.mxu1 }
 0x161   :  { %1437 = vmatmul.f32.gmra.mxu1 %v1939_v44  ;;  %1169 = vmatmul.f32.gmra.mxu3 %v2028_v6  ;;  %v960_v44 = vld [vmem:[#allocation4 + $0x280] sm:$0xff]  ;;  %v2162_v6 = vpop.f32.mrf.mxu3 }
 0x162   :  { %991 = vmatpush.msra.mxu2 %v960_v44 }
 0x163   :  { %v2138_v4 = vpop.f32.mrf.mxu2 }
 0x164   :  { %2408 = vst [vmem:[#allocation10_spill] sm:$0xff] %v2138_v4 }
 0x168   :  { %441 = vmatmul.f32.gmra.mxu2 %v1962_v57  ;;  %1315 = vmatmul.f32.gmra.mxu0 %v1977_v1 }
 0x169   :  { %1440 = vmatmul.f32.gmra.mxu1 %v1950_v51  ;;  %1172 = vmatmul.f32.gmra.mxu3 %v2036_v22  ;;  %v2160_v51 = vpop.f32.mrf.mxu0 }
 0x16b   :  { %v2150_v46 = vpop.f32.mrf.mxu2 }
 0x16c   :  { %2409 = vst [vmem:[#allocation11_spill] sm:$0xff] %v2150_v46 }
 0x170   :  { %444 = vmatmul.f32.gmra.mxu2 %v1977_v1  ;;  %1318 = vmatmul.f32.gmra.mxu0 %v1992_v12  ;;  %v2168_v1 = vpop.f32.mrf.mxu1 }
 0x171   :  { %1443 = vmatmul.f32.gmra.mxu1 %v1965_v59  ;;  %1175 = vmatmul.f32.gmra.mxu3 %v2044_v41  ;;  %v2172_v22 = vpop.f32.mrf.mxu0  ;;  %v2174_v59 = vpop.f32.mrf.mxu3 }
 0x173   :  { %v2158_v57 = vpop.f32.mrf.mxu2 }
 0x174   :  { %2410 = vst [vmem:[#allocation12_spill] sm:$0xff] %v2158_v57 }
 0x178   :  { %447 = vmatmul.f32.gmra.mxu2 %v1992_v12  ;;  %1321 = vmatmul.f32.gmra.mxu0 %v2001_v23  ;;  %v2181_v41 = vpop.f32.mrf.mxu1 }
 0x179   :  { %1446 = vmatmul.f32.gmra.mxu1 %v1980_v3  ;;  %1178 = vmatmul.f32.gmra.mxu3 %v2052_v56  ;;  %v1389_v3 = vld [vmem:[#allocation2 + $0x92] sm:$0xff]  ;;  %v2183_v43 = vpop.f32.mrf.mxu0  ;;  %v2187_v49 = vpop.f32.mrf.mxu3 }
 0x17b   :  { %v2170_v29 = vpop.f32.mrf.mxu2 }
 0x17c   :  { %2411 = vst [vmem:[#allocation13_spill] sm:$0xff] %v2170_v29 }
 0x180   :  { %450 = vmatmul.f32.gmra.mxu2 %v2001_v23  ;;  %1324 = vmatmul.f32.gmra.mxu0 %v2013_v40  ;;  %v2192_v56 = vpop.f32.mrf.mxu1 }
 0x181   :  { %1449 = vmatmul.f32.gmra.mxu1 %v1388_v39  ;;  %1181 = vmatmul.f32.gmra.mxu3 %v2062_v7  ;;  %v2197_v55 = vpop.f32.mrf.mxu3  ;;  %v945_v7 = vld [vmem:[#allocation2 + $0x32] sm:$0xff]  ;;  %v2204_v27 = vpop.f32.mrf.mxu0 }
 0x183   :  { %v2179_v12 = vpop.f32.mrf.mxu2 }
 0x184   :  { %2412 = vst [vmem:[#allocation14_spill] sm:$0xff] %v2179_v12  ;;  %v1396_v12 = vld [vmem:[#allocation2 + $0x122] sm:$0xff] }
 0x188   :  { %453 = vmatmul.f32.gmra.mxu2 %v2013_v40  ;;  %1327 = vmatmul.f32.gmra.mxu0 %v2025_v62  ;;  %v2199_v40 = vpop.f32.mrf.mxu1 }
 0x189   :  { %1452 = vmatmul.f32.gmra.mxu1 %v1389_v3  ;;  %v2207_v47 = vpop.f32.mrf.mxu3  ;;  %v2214_v61 = vpop.f32.mrf.mxu0 }
 0x18b   :  { %v2190_v23 = vpop.f32.mrf.mxu2 }
 0x18c   :  { %2413 = vst [vmem:[#allocation15_spill] sm:$0xff] %v2190_v23  ;;  %v949_v23 = vld [vmem:[#allocation2 + $0x72] sm:$0xff] }
 0x190   :  { %992 = vmatmul.f32.vlgmr.msra.gmra.mxu2 %v943_v19  ;;  %v2209_v63 = vpop.f32.mrf.mxu1 }
 0x191   :  { %1455 = vmatmul.f32.gmra.mxu1 %v2018_v48  ;;  %v2218_v17 = vpop.f32.mrf.mxu3  ;;  %v2225_v44 = vpop.f32.mrf.mxu0 }
 0x192   :  { %2414 = vst [vmem:[#allocation16_spill] sm:$0xff] %v2218_v17 }
 0x193   :  { %v2195_v37 = vpop.f32.mrf.mxu2  ;;  %2416 = vst [vmem:[#allocation18_spill] sm:$0xff] %v2225_v44 }
 0x198   :  { %995 = vmatmul.f32.gmra.mxu2 %v944_v54  ;;  %v2220_v5 = vpop.f32.mrf.mxu1  ;;  %v948_v54 = vld [vmem:[#allocation2 + $0x62] sm:$0xff] }
 0x199   :  { %1458 = vmatmul.f32.gmra.mxu1 %v2030_v8  ;;  %2415 = vst [vmem:[#allocation17_spill] sm:$0xff] %v2220_v5  ;;  %v2227_v3 = vpop.f32.mrf.mxu3 }
 0x19a   :  { %2417 = vst [vmem:[#allocation19_spill] sm:$0xff] %v2227_v3 }
 0x19b   :  { %v2202_v62 = vpop.f32.mrf.mxu2 }
 0x1a0   :  { %998 = vmatmul.f32.gmra.mxu2 %v945_v7  ;;  %v2229_v19 = vpop.f32.mrf.mxu1 }
 0x1a1   :  { %1461 = vmatmul.f32.gmra.mxu1 %v2038_v24  ;;  %2418 = vst [vmem:[#allocation20_spill] sm:$0xff] %v2229_v19 }
 0x1a3   :  { %v2211_v35 = vpop.f32.mrf.mxu2 }
 0x1a8   :  { %1001 = vmatmul.f32.gmra.mxu2 %v946_v2  ;;  %v2234_v2 = vpop.f32.mrf.mxu0  ;;  %v2238_v29 = vpop.f32.mrf.mxu1 }
 0x1a9   :  { %1464 = vmatmul.f32.gmra.mxu1 %v2046_v42  ;;  %2419 = vst [vmem:[#allocation21_spill] sm:$0xff] %v2234_v2 }
 0x1aa   :  { %2421 = vst [vmem:[#allocation23_spill] sm:$0xff] %v2238_v29 }
 0x1ab   :  { %v2216_v16 = vpop.f32.mrf.mxu2 }
 0x1b0   :  { %1004 = vmatmul.f32.gmra.mxu2 %v947_v26  ;;  %v2236_v26 = vpop.f32.mrf.mxu3  ;;  %v2242_v46 = vpop.f32.mrf.mxu0 }
 0x1b1   :  { %1467 = vmatmul.f32.gmra.mxu1 %v2054_v58  ;;  %2420 = vst [vmem:[#allocation22_spill] sm:$0xff] %v2236_v26  ;;  %v2246_v19 = vpop.f32.mrf.mxu1 }
 0x1b2   :  { %2422 = vst [vmem:[#allocation24_spill] sm:$0xff] %v2242_v46 }
 0x1b3   :  { %v2223_v34 = vpop.f32.mrf.mxu2  ;;  %2424 = vst [vmem:[#allocation26_spill] sm:$0xff] %v2246_v19 }
 0x1b8   :  { %1007 = vmatmul.f32.gmra.mxu2 %v948_v54  ;;  %v2244_v54 = vpop.f32.mrf.mxu3  ;;  %v2251_v2 = vpop.f32.mrf.mxu0 }
 0x1b9   :  { %1470 = vmatmul.f32.gmra.mxu1 %v2064_v14  ;;  %2423 = vst [vmem:[#allocation25_spill] sm:$0xff] %v2244_v54  ;;  %v2257_v29 = vpop.f32.mrf.mxu1 }
 0x1ba   :  { %2425 = vst [vmem:[#allocation27_spill] sm:$0xff] %v2251_v2  ;;  %v1105_v2 = vld [vmem:[#allocation2 + $0x130] sm:$0xff] }
 0x1bb   :  { %v2232_v7 = vpop.f32.mrf.mxu2  ;;  %2427 = vst [vmem:[#allocation29_spill] sm:$0xff] %v2257_v29  ;;  %1184 = vmatmul.f32.gmra.mxu3 %v1105_v2 }
 0x1c0   :  { %1010 = vmatmul.f32.gmra.mxu2 %v949_v23  ;;  %v2255_v26 = vpop.f32.mrf.mxu3  ;;  %v2262_v46 = vpop.f32.mrf.mxu0 }
 0x1c1   :  { %1473 = vmatmul.f32.gmra.mxu1 %v1396_v12  ;;  %2426 = vst [vmem:[#allocation28_spill] sm:$0xff] %v2255_v26  ;;  %v2266_v19 = vpop.f32.mrf.mxu1 }
 0x1c2   :  { %2428 = vst [vmem:[#allocation30_spill] sm:$0xff] %v2262_v46  ;;  %v1397_v46 = vld [vmem:[#allocation2 + $0x132] sm:$0xff] }
 0x1c3   :  { %v2240_v57 = vpop.f32.mrf.mxu2  ;;  %2430 = vst [vmem:[#allocation32_spill] sm:$0xff] %v2266_v19  ;;  %1476 = vmatmul.f32.vlgmr.msrb.gmra.mxu3 %v1397_v46 }
 0x1c8   :  { %1013 = vmatmul.f32.gmra.mxu2 %v1388_v39  ;;  %v2264_v54 = vpop.f32.mrf.mxu3  ;;  %v2271_v44 = vpop.f32.mrf.mxu0 }
 0x1c9   :  { %2429 = vst [vmem:[#allocation31_spill] sm:$0xff] %v2264_v54  ;;  %v1251_v54 = vld [vmem:[#allocation2 + $0x131] sm:$0xff] }
 0x1ca   :  { %2432 = vst [vmem:[#allocation34_spill] sm:$0xff] %v2271_v44  ;;  %1330 = vmatmul.f32.gmra.mxu0 %v1251_v54 }
 0x1cb   :  { %v2248_v3 = vpop.f32.mrf.mxu2 }
 0x1d0   :  { %1016 = vmatmul.f32.gmra.mxu2 %v2004_v28  ;;  %v2273_v26 = vpop.f32.mrf.mxu3 }
 0x1d1   :  { %2433 = vst [vmem:[#allocation35_spill] sm:$0xff] %v2273_v26 }
 0x1d3   :  { %v2253_v23 = vpop.f32.mrf.mxu2 }
 0x1d8   :  { %1019 = vmatmul.f32.gmra.mxu2 %v2018_v48  ;;  %v2276_v48 = vpop.f32.mrf.mxu1  ;;  %v1140_v19 = vpop.f32.mrf.mxu3 }
 0x1d9   :  { %2434 = vst [vmem:[#allocation36_spill] sm:$0xff] %v2276_v48 }
 0x1db   :  { %v2260_v39 = vpop.f32.mrf.mxu2 }
 0x1e0   :  { %1022 = vmatmul.f32.gmra.mxu2 %v2030_v8  ;;  %v2281_v8 = vpop.f32.mrf.mxu0  ;;  %v1143_v48 = vpop.f32.mrf.mxu3 }
 0x1e1   :  { %2436 = vst [vmem:[#allocation38_spill] sm:$0xff] %v2281_v8 }
 0x1e3   :  { %v2269_v28 = vpop.f32.mrf.mxu2 }
 0x1e4   :  { %2431 = vst [vmem:[#allocation33_spill] sm:$0xff] %v2269_v28  ;;  %v2283_v28 = vpop.f32.mrf.mxu1 }
 0x1e5   :  { %2437 = vst [vmem:[#allocation39_spill] sm:$0xff] %v2283_v28 }
 0x1e8   :  { %1025 = vmatmul.f32.gmra.mxu2 %v2038_v24  ;;  %v1286_v24 = vpop.f32.mrf.mxu0  ;;  %v1146_v8 = vpop.f32.mrf.mxu3 }
 0x1eb   :  { %v2278_v29 = vpop.f32.mrf.mxu2 }
 0x1ec   :  { %2435 = vst [vmem:[#allocation37_spill] sm:$0xff] %v2278_v29  ;;  %v1432_v44 = vpop.f32.mrf.mxu1 }
 0x1f0   :  { %1028 = vmatmul.f32.gmra.mxu2 %v2046_v42  ;;  %v1289_v54 = vpop.f32.mrf.mxu0  ;;  %v473_v42 = vadd.f32 %v2195_v37, %v2060_v10 }
 0x1f2   :  { %v619_v28 = vadd.f32 %v2111_v13, %v473_v42 }
 0x1f3   :  { %v2285_v2 = vpop.f32.mrf.mxu2 }
 0x1f4   :  { %2438 = vst [vmem:[#allocation40_spill] sm:$0xff] %v2285_v2  ;;  %v1435_v29 = vpop.f32.mrf.mxu1 }
 0x1f8   :  { %1031 = vmatmul.f32.gmra.mxu2 %v2054_v58  ;;  %v474_v58 = vadd.f32 %v2202_v62, %v2069_v18  ;;  %v1292_v4 = vpop.f32.mrf.mxu0  ;;  %v2309_v18 = vld [vmem:[%s2406_s4] ss:$0 sm:$0xff]  ;;  %s1732_s4 = smov [#allocation7]  }
 0x1f9   :  { %s1600_s17 = sshll.u32 %s1732_s4, 4  ;;  %s1601_s17 = int_to_ptr.vmem [resolvable:$true] %s1600_s17 }
 0x1fb   :  { %v2288_v26 = vpop.f32.mrf.mxu2 }
 0x1fc   :  { %2439 = vst [vmem:[#allocation41_spill] sm:$0xff] %v2288_v26  ;;  %v765_v26 = vadd.f32 %v2109_v45, %v619_v28  ;;  %v1438_v5 = vpop.f32.mrf.mxu1 }
 0x1fe   :  { %v911_v17 = vadd.f32 %v2128_v21, %v765_v26 }
 0x200   :  { %1034 = vmatmul.f32.gmra.mxu2 %v2064_v14  ;;  %v1149_v14 = vpop.f32.mrf.mxu3  ;;  %v1295_v45 = vpop.f32.mrf.mxu0 }
 0x203   :  { %v2291_v46 = vpop.f32.mrf.mxu2 }
 0x204   :  { %2440 = vst [vmem:[#allocation42_spill] sm:$0xff] %v2291_v46  ;;  %v620_v46 = vadd.f32 %v2120_v25, %v474_v58 }
 0x206   :  { %v766_v42 = vadd.f32 %v2118_v20, %v620_v46  ;;  %v476_v20 = vadd.f32 %v2216_v16, %v2085_v38  ;;  %v477_v38 = vadd.f32 %v2223_v34, %v2091_v50 }
 0x208   :  { %1037 = vmatmul.f32.gmra.mxu2 %v1396_v12  ;;  %v475_v12 = vadd.f32 %v2211_v35, %v2078_v9  ;;  %v1152_v25 = vpop.f32.mrf.mxu3  ;;  %v912_v21 = vadd.f32 %v2140_v30, %v766_v42  ;;  %v1298_v30 = vpop.f32.mrf.mxu0 }
 0x20a   :  { %v621_v62 = vadd.f32 %v2134_v33, %v475_v12  ;;  %v622_v33 = vadd.f32 %v2148_v36, %v476_v20  ;;  %v623_v36 = vadd.f32 %v2162_v6, %v477_v38 }
 0x20b   :  { %v2296_v2 = vpop.f32.mrf.mxu2 }
 0x20c   :  { %2441 = vst [vmem:[#allocation43_spill] sm:$0xff] %v2296_v2  ;;  %v767_v46 = vadd.f32 %v2130_v32, %v621_v62  ;;  %v768_v32 = vadd.f32 %v2146_v15, %v622_v33  ;;  %v769_v15 = vadd.f32 %v2160_v51, %v623_v36 }
 0x213   :  { %v993_v10 = vpop.f32.mrf.mxu2 }
 0x214   :  { %v1057_v37 = vadd.f32 %v993_v10, %v911_v17  ;;  %v1441_v17 = vpop.f32.mrf.mxu1 }
 0x216   :  { %v1204_v13 = vadd.f32 %v1140_v19, %v1057_v37  ;;  %v1155_v37 = vpop.f32.mrf.mxu3 }
 0x218   :  { %v1350_v2 = vadd.f32 %v1286_v24, %v1204_v13 }
 0x21a   :  { %v1496_v28 = vadd.f32 %v1432_v44, %v1350_v2  ;;  %v913_v44 = vadd.f32 %v2154_v11, %v767_v46  ;;  %v914_v11 = vadd.f32 %v2168_v1, %v768_v32  ;;  %v915_v1 = vadd.f32 %v2181_v41, %v769_v15 }
 0x21b   :  { %v996_v26 = vpop.f32.mrf.mxu2 }
 0x21c   :  { %v1548_v9 = vadd.f32 %v2309_v18, %v1496_v28  ;;  %v1058_v35 = vadd.f32 %v996_v26, %v912_v21  ;;  %v1444_v42 = vpop.f32.mrf.mxu1  ;;  %v1301_v26 = vpop.f32.mrf.mxu0 }
 0x21e   :  { %v1564_v19 = vmax.f32 %v1548_v9, 0.0  ;;  %v1205_v24 = vadd.f32 %v1143_v48, %v1058_v35  ;;  %v478_v9 = vadd.f32 %v2232_v7, %v2097_v0  ;;  %v1158_v50 = vpop.f32.mrf.mxu3  ;;  %v479_v0 = vadd.f32 %v2240_v57, %v2105_v53 }
 0x21f   :  { %v480_v53 = vadd.f32 %v2248_v3, %v2116_v60  ;;  %v481_v60 = vadd.f32 %v2253_v23, %v2114_v52  ;;  %v482_v52 = vadd.f32 %v2260_v39, %v2126_v31 }
 0x220   :  { %1580 = vst [vmem:[#allocation7] sm:$0xff] %v1564_v19  ;;  %v1351_v58 = vadd.f32 %v1289_v54, %v1205_v24  ;;  %v624_v6 = vadd.f32 %v2174_v59, %v478_v9  ;;  %v625_v59 = vadd.f32 %v2187_v49, %v479_v0  ;;  %v2446_v0 = vld [vmem:[#allocation18_spill] sm:$0xff] }
 0x222   :  { %v1497_v10 = vadd.f32 %v1435_v29, %v1351_v58 }
 0x223   :  { %v999_v2 = vpop.f32.mrf.mxu2 }
 0x224   :  { %v1549_v12 = vadd.f32 %v2309_v18, %v1497_v10  ;;  %v1059_v13 = vadd.f32 %v999_v2, %v913_v44  ;;  %v1447_v35 = vpop.f32.mrf.mxu1  ;;  %v1304_v51 = vpop.f32.mrf.mxu0 }
 0x226   :  { %v1565_v16 = vmax.f32 %v1549_v12, 0.0  ;;  %v1206_v48 = vadd.f32 %v1146_v8, %v1059_v13  ;;  %v1161_v58 = vpop.f32.mrf.mxu3  ;;  %v626_v13 = vadd.f32 %v2197_v55, %v480_v53  ;;  %v627_v55 = vadd.f32 %v2207_v47, %v481_v60  ;;  %v2442_v47 = vld [vmem:[#allocation16_spill] sm:$0xff] }
 0x228   :  { %1581 = vst [vmem:[#allocation7 + $0x8] sm:$0xff] %v1565_v16  ;;  %v1352_v54 = vadd.f32 %v1292_v4, %v1206_v48 }
 0x22a   :  { %v1498_v29 = vadd.f32 %v1438_v5, %v1352_v54 }
 0x22b   :  { %v1002_v62 = vpop.f32.mrf.mxu2 }
 0x22c   :  { %v1550_v28 = vadd.f32 %v2309_v18, %v1498_v29  ;;  %v1060_v21 = vadd.f32 %v1002_v62, %v914_v11  ;;  %v1450_v33 = vpop.f32.mrf.mxu1 }
 0x22e   :  { %v1566_v34 = vmax.f32 %v1550_v28, 0.0  ;;  %v1207_v8 = vadd.f32 %v1149_v14, %v1060_v21  ;;  %v770_v14 = vadd.f32 %v2172_v22, %v624_v6  ;;  %v771_v22 = vadd.f32 %v2183_v43, %v625_v59  ;;  %v1164_v49 = vpop.f32.mrf.mxu3 }
 0x22f   :  { %v772_v43 = vadd.f32 %v2204_v27, %v626_v13  ;;  %v773_v27 = vadd.f32 %v2214_v61, %v627_v55 }
 0x230   :  { %1582 = vst [vmem:[#allocation7 + $0x10] sm:$0xff] %v1566_v34  ;;  %v1353_v4 = vadd.f32 %v1295_v45, %v1207_v8  ;;  %v916_v41 = vadd.f32 %v2192_v56, %v770_v14  ;;  %v917_v56 = vadd.f32 %v2199_v40, %v771_v22  ;;  %v628_v34 = vadd.f32 %v2442_v47, %v482_v52  ;;  %v2447_v14 = vld [vmem:[#allocation19_spill] sm:$0xff] }
 0x231   :  { %v918_v29 = vadd.f32 %v2209_v63, %v772_v43  ;;  %v2443_v63 = vld [vmem:[#allocation17_spill] sm:$0xff]  ;;  %v2455_v43 = vld [vmem:[#allocation40_spill] sm:$0xff] }
 0x232   :  { %v1499_v5 = vadd.f32 %v1441_v17, %v1353_v4  ;;  %v919_v15 = vadd.f32 %v2443_v63, %v773_v27  ;;  %v774_v61 = vadd.f32 %v2446_v0, %v628_v34  ;;  %v2460_v63 = vld [vmem:[#allocation41_spill] sm:$0xff] }
 0x233   :  { %v1005_v20 = vpop.f32.mrf.mxu2 }
 0x234   :  { %v1551_v19 = vadd.f32 %v2309_v18, %v1499_v5  ;;  %v1061_v24 = vadd.f32 %v1005_v20, %v915_v1  ;;  %v1453_v38 = vpop.f32.mrf.mxu1  ;;  %v2444_v1 = vld [vmem:[#allocation10_spill] sm:$0xff]  ;;  %v2445_v20 = vld [vmem:[#allocation33_spill] sm:$0xff] }
 0x236   :  { %v1567_v7 = vmax.f32 %v1551_v19, 0.0  ;;  %v1208_v46 = vadd.f32 %v1152_v25, %v1061_v24  ;;  %v1167_v62 = vpop.f32.mrf.mxu3  ;;  %v483_v19 = vadd.f32 %v2445_v20, %v2444_v1  ;;  %v2462_v20 = vld [vmem:[#allocation28_spill] sm:$0xff] }
 0x238   :  { %1583 = vst [vmem:[#allocation7 + $0x18] sm:$0xff] %v1567_v7  ;;  %v1354_v45 = vadd.f32 %v1298_v30, %v1208_v46  ;;  %v1307_v30 = vpop.f32.mrf.mxu0 }
 0x23a   :  { %v1500_v17 = vadd.f32 %v1444_v42, %v1354_v45  ;;  %v2448_v45 = vld [vmem:[#allocation20_spill] sm:$0xff] }
 0x23b   :  { %v1008_v10 = vpop.f32.mrf.mxu2 }
 0x23c   :  { %v1552_v44 = vadd.f32 %v2309_v18, %v1500_v17  ;;  %v1062_v2 = vadd.f32 %v1008_v10, %v916_v41  ;;  %v2449_v10 = vld [vmem:[#allocation11_spill] sm:$0xff] }
 0x23e   :  { %v1568_v57 = vmax.f32 %v1552_v44, 0.0  ;;  %v1209_v25 = vadd.f32 %v1155_v37, %v1062_v2  ;;  %v1170_v31 = vpop.f32.mrf.mxu3  ;;  %v2450_v44 = vld [vmem:[#allocation37_spill] sm:$0xff] }
 0x23f   :  { %v484_v2 = vadd.f32 %v2450_v44, %v2449_v10 }
 0x240   :  { %1584 = vst [vmem:[#allocation7 + $0x20] sm:$0xff] %v1568_v57  ;;  %v1355_v12 = vadd.f32 %v1301_v26, %v1209_v25  ;;  %v1310_v40 = vpop.f32.mrf.mxu0  ;;  %v1456_v26 = vpop.f32.mrf.mxu1  ;;  %v2451_v25 = vld [vmem:[#allocation21_spill] sm:$0xff] }
 0x242   :  { %v1501_v42 = vadd.f32 %v1447_v35, %v1355_v12 }
 0x243   :  { %v1011_v16 = vpop.f32.mrf.mxu2 }
 0x244   :  { %v1553_v48 = vadd.f32 %v2309_v18, %v1501_v42  ;;  %v1063_v32 = vadd.f32 %v1011_v16, %v917_v56  ;;  %v2452_v42 = vld [vmem:[#allocation22_spill] sm:$0xff]  ;;  %v2453_v16 = vld [vmem:[#allocation23_spill] sm:$0xff] }
 0x245   :  { %v630_v56 = vadd.f32 %v2452_v42, %v484_v2  ;;  %v2467_v2 = vld [vmem:[#allocation31_spill] sm:$0xff] }
 0x246   :  { %v1569_v3 = vmax.f32 %v1553_v48, 0.0  ;;  %v1210_v37 = vadd.f32 %v1158_v50, %v1063_v32 }
 0x248   :  { %1585 = vst [vmem:[#allocation7 + $0x28] sm:$0xff] %v1569_v3  ;;  %v1356_v54 = vadd.f32 %v1304_v51, %v1210_v37  ;;  %v1313_v5 = vpop.f32.mrf.mxu0  ;;  %v1459_v7 = vpop.f32.mrf.mxu1  ;;  %v629_v51 = vadd.f32 %v2447_v14, %v483_v19  ;;  %v2454_v37 = vld [vmem:[#allocation12_spill] sm:$0xff] }
 0x24a   :  { %v1502_v36 = vadd.f32 %v1450_v33, %v1356_v54  ;;  %v920_v33 = vadd.f32 %v2448_v45, %v774_v61  ;;  %v775_v22 = vadd.f32 %v2451_v25, %v629_v51  ;;  %v485_v54 = vadd.f32 %v2455_v43, %v2454_v37  ;;  %v2465_v45 = vld [vmem:[#allocation42_spill] sm:$0xff]  ;;  %v2468_v25 = vld [vmem:[#allocation32_spill] sm:$0xff] }
 0x24b   :  { %v1014_v11 = vpop.f32.mrf.mxu2 }
 0x24c   :  { %v1554_v28 = vadd.f32 %v2309_v18, %v1502_v36  ;;  %v1064_v21 = vadd.f32 %v1014_v11, %v918_v29  ;;  %v921_v48 = vadd.f32 %v2453_v16, %v775_v22  ;;  %v2456_v29 = vld [vmem:[#allocation24_spill] sm:$0xff] }
 0x24e   :  { %v1570_v23 = vmax.f32 %v1554_v28, 0.0  ;;  %v1211_v9 = vadd.f32 %v1161_v58, %v1064_v21  ;;  %v2457_v28 = vld [vmem:[#allocation25_spill] sm:$0xff] }
 0x24f   :  { %v631_v21 = vadd.f32 %v2457_v28, %v485_v54  ;;  %v2472_v54 = vld [vmem:[#allocation35_spill] sm:$0xff] }
 0x250   :  { %1586 = vst [vmem:[#allocation7 + $0x30] sm:$0xff] %v1570_v23  ;;  %v1357_v50 = vadd.f32 %v1307_v30, %v1211_v9  ;;  %v1316_v12 = vpop.f32.mrf.mxu0  ;;  %v1173_v30 = vpop.f32.mrf.mxu3  ;;  %v2458_v23 = vld [vmem:[#allocation26_spill] sm:$0xff] }
 0x252   :  { %v1503_v8 = vadd.f32 %v1453_v38, %v1357_v50 }
 0x253   :  { %v1017_v35 = vpop.f32.mrf.mxu2 }
 0x254   :  { %v1555_v4 = vadd.f32 %v2309_v18, %v1503_v8  ;;  %v1065_v6 = vadd.f32 %v1017_v35, %v919_v15  ;;  %v2459_v8 = vld [vmem:[#allocation13_spill] sm:$0xff] }
 0x255   :  { %v486_v15 = vadd.f32 %v2460_v63, %v2459_v8  ;;  %v2475_v8 = vld [vmem:[#allocation39_spill] sm:$0xff] }
 0x256   :  { %v1571_v39 = vmax.f32 %v1555_v4, 0.0  ;;  %v1212_v24 = vadd.f32 %v1164_v49, %v1065_v6  ;;  %v1462_v49 = vpop.f32.mrf.mxu1  ;;  %v2461_v6 = vld [vmem:[#allocation27_spill] sm:$0xff] }
 0x257   :  { %v632_v19 = vadd.f32 %v2462_v20, %v486_v15 }
 0x258   :  { %1587 = vst [vmem:[#allocation7 + $0x38] sm:$0xff] %v1571_v39  ;;  %v1358_v46 = vadd.f32 %v1310_v40, %v1212_v24  ;;  %v776_v40 = vadd.f32 %v2456_v29, %v630_v56  ;;  %v2463_v39 = vld [vmem:[#allocation29_spill] sm:$0xff]  ;;  %v2469_v56 = vld [vmem:[#allocation15_spill] sm:$0xff]  ;;  %v2473_v29 = vld [vmem:[#allocation36_spill] sm:$0xff] }
 0x25a   :  { %v1504_v58 = vadd.f32 %v1456_v26, %v1358_v46  ;;  %v1176_v26 = vpop.f32.mrf.mxu3  ;;  %v922_v9 = vadd.f32 %v2458_v23, %v776_v40 }
 0x25b   :  { %v1020_v59 = vpop.f32.mrf.mxu2 }
 0x25c   :  { %v1556_v17 = vadd.f32 %v2309_v18, %v1504_v58  ;;  %v1066_v41 = vadd.f32 %v1020_v59, %v920_v33  ;;  %v2464_v58 = vld [vmem:[#allocation14_spill] sm:$0xff] }
 0x25d   :  { %v487_v33 = vadd.f32 %v2465_v45, %v2464_v58 }
 0x25e   :  { %v1572_v53 = vmax.f32 %v1556_v17, 0.0  ;;  %v1213_v57 = vadd.f32 %v1167_v62, %v1066_v41  ;;  %v1319_v62 = vpop.f32.mrf.mxu0  ;;  %v1465_v27 = vpop.f32.mrf.mxu1  ;;  %v2466_v41 = vld [vmem:[#allocation30_spill] sm:$0xff] }
 0x25f   :  { %v778_v10 = vadd.f32 %v2466_v41, %v632_v19 }
 0x260   :  { %1588 = vst [vmem:[#allocation7 + $0x40] sm:$0xff] %v1572_v53  ;;  %v1359_v13 = vadd.f32 %v1313_v5, %v1213_v57  ;;  %v777_v5 = vadd.f32 %v2461_v6, %v631_v21  ;;  %v633_v53 = vadd.f32 %v2467_v2, %v487_v33 }
 0x261   :  { %v924_v22 = vadd.f32 %v2468_v25, %v778_v10 }
 0x262   :  { %v1505_v38 = vadd.f32 %v1459_v7, %v1359_v13  ;;  %v923_v24 = vadd.f32 %v2463_v39, %v777_v5  ;;  %v1179_v14 = vpop.f32.mrf.mxu3 }
 0x263   :  { %v1023_v32 = vpop.f32.mrf.mxu2 }
 0x264   :  { %v1557_v60 = vadd.f32 %v2309_v18, %v1505_v38  ;;  %v1067_v3 = vadd.f32 %v1023_v32, %v921_v48  ;;  %v2470_v38 = vld [vmem:[#allocation43_spill] sm:$0xff] }
 0x265   :  { %v488_v16 = vadd.f32 %v2470_v38, %v2469_v56 }
 0x266   :  { %v1573_v55 = vmax.f32 %v1557_v60, 0.0  ;;  %v1214_v36 = vadd.f32 %v1170_v31, %v1067_v3  ;;  %v1322_v0 = vpop.f32.mrf.mxu0  ;;  %v1468_v51 = vpop.f32.mrf.mxu1  ;;  %v2471_v60 = vld [vmem:[#allocation34_spill] sm:$0xff] }
 0x267   :  { %v779_v3 = vadd.f32 %v2471_v60, %v633_v53 }
 0x268   :  { %1589 = vst [vmem:[#allocation7 + $0x48] sm:$0xff] %v1573_v55  ;;  %v1360_v11 = vadd.f32 %v1316_v12, %v1214_v36  ;;  %v634_v55 = vadd.f32 %v2472_v54, %v488_v16 }
 0x269   :  { %v925_v40 = vadd.f32 %v2473_v29, %v779_v3 }
 0x26a   :  { %v1506_v52 = vadd.f32 %v1462_v49, %v1360_v11  ;;  %v1182_v42 = vpop.f32.mrf.mxu3 }
 0x26b   :  { %v1026_v50 = vpop.f32.mrf.mxu2 }
 0x26c   :  { %v1558_v47 = vadd.f32 %v2309_v18, %v1506_v52  ;;  %v1068_v34 = vadd.f32 %v1026_v50, %v922_v9  ;;  %v2474_v9 = vld [vmem:[#allocation38_spill] sm:$0xff] }
 0x26e   :  { %v1574_v35 = vmax.f32 %v1558_v47, 0.0  ;;  %v1215_v4 = vadd.f32 %v1173_v30, %v1068_v34  ;;  %v1325_v49 = vpop.f32.mrf.mxu0  ;;  %v1471_v37 = vpop.f32.mrf.mxu1 }
 0x270   :  { %1590 = vst [vmem:[#allocation7 + $0x50] sm:$0xff] %v1574_v35  ;;  %v1361_v1 = vadd.f32 %v1319_v62, %v1215_v4 }
 0x272   :  { %v1507_v31 = vadd.f32 %v1465_v27, %v1361_v1  ;;  %v780_v27 = vadd.f32 %v2474_v9, %v634_v55 }
 0x273   :  { %v1029_v61 = vpop.f32.mrf.mxu2 }
 0x274   :  { %v1559_v7 = vadd.f32 %v2309_v18, %v1507_v31  ;;  %v1069_v46 = vadd.f32 %v1029_v61, %v923_v24  ;;  %v926_v63 = vadd.f32 %v2475_v8, %v780_v27 }
 0x276   :  { %v1575_v59 = vmax.f32 %v1559_v7, 0.0  ;;  %v1216_v17 = vadd.f32 %v1176_v26, %v1069_v46  ;;  %v1328_v21 = vpop.f32.mrf.mxu0  ;;  %v1185_v26 = vpop.f32.mrf.mxu3 }
 0x277   :  { %v1474_v47 = vpop.f32.mrf.mxu1 }
 0x278   :  { %1591 = vst [vmem:[#allocation7 + $0x58] sm:$0xff] %v1575_v59  ;;  %v1362_v44 = vadd.f32 %v1322_v0, %v1216_v17 }
 0x27a   :  { %v1508_v57 = vadd.f32 %v1468_v51, %v1362_v44 }
 0x27b   :  { %v1032_v12 = vpop.f32.mrf.mxu2 }
 0x27c   :  { %v1560_v30 = vadd.f32 %v2309_v18, %v1508_v57  ;;  %v1070_v13 = vadd.f32 %v1032_v12, %v924_v22 }
 0x27e   :  { %v1576_v48 = vmax.f32 %v1560_v30, 0.0  ;;  %v1217_v32 = vadd.f32 %v1179_v14, %v1070_v13  ;;  %v1331_v6 = vpop.f32.mrf.mxu0  ;;  %v1477_v20 = vpop.f32.mrf.mxu3 }
 0x280   :  { %1592 = vst [vmem:[#allocation7 + $0x60] sm:$0xff] %v1576_v48  ;;  %v1363_v43 = vadd.f32 %v1325_v49, %v1217_v32 }
 0x282   :  { %v1509_v36 = vadd.f32 %v1471_v37, %v1363_v43 }
 0x283   :  { %v1035_v11 = vpop.f32.mrf.mxu2 }
 0x284   :  { %v1561_v62 = vadd.f32 %v2309_v18, %v1509_v36  ;;  %v1071_v28 = vadd.f32 %v1035_v11, %v925_v40 }
 0x286   :  { %v1577_v52 = vmax.f32 %v1561_v62, 0.0  ;;  %v1218_v23 = vadd.f32 %v1182_v42, %v1071_v28 }
 0x288   :  { %1593 = vst [vmem:[#allocation7 + $0x68] sm:$0xff] %v1577_v52  ;;  %v1364_v50 = vadd.f32 %v1328_v21, %v1218_v23 }
 0x28a   :  { %v1510_v34 = vadd.f32 %v1474_v47, %v1364_v50 }
 0x28b   :  { %v1038_v15 = vpop.f32.mrf.mxu2 }
 0x28c   :  { %v1562_v35 = vadd.f32 %v2309_v18, %v1510_v34  ;;  %v1072_v4 = vadd.f32 %v1038_v15, %v926_v63 }
 0x28e   :  { %v1578_v5 = vmax.f32 %v1562_v35, 0.0  ;;  %v1219_v1 = vadd.f32 %v1185_v26, %v1072_v4 }
 0x290   :  { %1594 = vst [vmem:[#allocation7 + $0x70] sm:$0xff] %v1578_v5  ;;  %v1365_v19 = vadd.f32 %v1331_v6, %v1219_v1 }
 0x292   :  { %v1511_v31 = vadd.f32 %v1477_v20, %v1365_v19 }
 0x294   :  { %v1563_v39 = vadd.f32 %v2309_v18, %v1511_v31 }
 0x296   :  { %v1579_v24 = vmax.f32 %v1563_v39, 0.0 }
 0x298   :  { %1595 = vst [vmem:[#allocation7 + $0x78] sm:$0xff] %v1579_v24 }
 0x299   :  { %1608 = dma.vmem_to_hbm [thread:$0]  %s1601_s17, 2048, %s1603_s20, [#allocation6], %s1729_s23, %s1729_s23, %s1730_s24  }
 0x29a   :  { %1726 = dma.done.wait [#allocation6], 2048  }
 0x29b   :  { %1727 = vsyncadd [#allocation6], 4294965248 }
 0x29c   :  { %1613 = vsyncpa [#allocation5], 1 }
 0x29d   :  { %1614 = vsyncpa [#allocation6], 1 }

</bundles_post_ra>
